<compile_context>
chip_gen: v5e
topology: v5e:2x2
jax: 0.10.0
libtpu: 0.0.40
codegen_flags: <defaults>
</compile_context>

<pallas_src>
import functools

import jax
import jax.numpy as jnp
from jax.experimental import pallas as pl
from jax.experimental.pallas import tpu as pltpu


LANE = 128                     # Q head padded to the TPU lane width
VMEM_LIMIT = 32 * 1024 * 1024  # safe scoped-VMEM budget on v5e/v6e/v7x

# conv geometry fixed by the DQN architecture
K1, S1 = 8, 4
K2, S2 = 4, 2
K3, S3 = 3, 1


def _round_up(n, m):
    return ((n + m - 1) // m) * m


def _conv_out(s, k, st):
    return (s - k) // st + 1


def _geometry(input_shape):
    c, h, w = input_shape
    # TODO(synk): support H/W not divisible by the conv1 stride (84x84 and the
    # 36x36 test shape both satisfy it).
    assert h % S1 == 0 and w % S1 == 0, "H, W must be divisible by conv1 stride"
    assert K1 % S1 == 0
    ho1, wo1 = _conv_out(h, K1, S1), _conv_out(w, K1, S1)
    ho2, wo2 = _conv_out(ho1, K2, S2), _conv_out(wo1, K2, S2)
    ho3, wo3 = _conv_out(ho2, K3, S3), _conv_out(wo2, K3, S3)
    assert ho3 >= 1 and wo3 >= 1, "input too small for the conv stack"
    return dict(cin=c, hb=h // S1, wb=w // S1, kb1=K1 // S1,
                ho1=ho1, wo1=wo1, ho2=ho2, wo2=wo2, ho3=ho3, wo3=wo3)


# ----------------------------------------------------------------------------
# Fused Pallas kernel: whole DQN forward for one sample per grid step.
# ----------------------------------------------------------------------------
def _dqn_fused_kernel(x_ref, w1_ref, b1_ref, w2_ref, b2_ref, w3_ref, b3_ref,
                      f1w_ref, f1b_ref, qw_ref, qb_ref, q_ref, *, g):
    wb, kb1 = g["wb"], g["kb1"]
    ho1, wo1 = g["ho1"], g["wo1"]
    ho2, wo2 = g["ho2"], g["wo2"]
    ho3, wo3 = g["ho3"], g["wo3"]

    def mm_bias(a, w_ref, b_ref, relu):
        # bf16 MXU inputs, f32 accumulation, f32 bias/ReLU epilogue.
        y = jnp.dot(a.astype(jnp.bfloat16), w_ref[...],
                    preferred_element_type=jnp.float32)
        y = y + b_ref[...]
        if relu:
            y = jnp.maximum(y, 0.0)
        return y

    # ---- conv1 -------------------------------------------------------------
    # x is the space-to-depth(S1) input: rows = (q, p) stride-grid raster,
    # lanes = (ri, rj, cin).  Conv1 becomes a kb1 x kb1, stride-1 conv, so
    # patch extraction is pure unit-stride slicing of the VMEM block.
    x = x_ref[0]                                            # (hb*wb, S1*S1*cin)
    row_groups = []
    for oh in range(ho1):
        pieces = []
        for bi in range(kb1):
            for bj in range(kb1):
                r0 = (bi + oh) * wb + bj
                pieces.append(x[r0:r0 + wo1, :])            # (wo1, S1*S1*cin)
        row_groups.append(jnp.concatenate(pieces, axis=1))
    patch = jnp.concatenate(row_groups, axis=0)             # (ho1*wo1, K1c)
    a1 = mm_bias(patch, w1_ref, b1_ref, True)               # (ho1*wo1, 32) f32

    # ---- conv2 (4x4, stride 2): in-VMEM im2col over a1 ----------------------
    rows = []
    for oh in range(ho2):
        for ow in range(wo2):
            pieces = []
            for i in range(K2):
                for j in range(K2):
                    r = (S2 * oh + i) * wo1 + (S2 * ow + j)
                    pieces.append(a1[r:r + 1, :])
            rows.append(jnp.concatenate(pieces, axis=1))    # (1, K2*K2*32)
    patch = jnp.concatenate(rows, axis=0)                   # (ho2*wo2, 512)
    a2 = mm_bias(patch, w2_ref, b2_ref, True)               # (ho2*wo2, 64)

    # ---- conv3 (3x3, stride 1) ----------------------------------------------
    rows = []
    for oh in range(ho3):
        for ow in range(wo3):
            pieces = []
            for i in range(K3):
                for j in range(K3):
                    r = (oh + i) * wo2 + (ow + j)
                    pieces.append(a2[r:r + 1, :])
            rows.append(jnp.concatenate(pieces, axis=1))    # (1, K3*K3*64)
    patch = jnp.concatenate(rows, axis=0)                   # (ho3*wo3, 576)
    a3 = mm_bias(patch, w3_ref, b3_ref, True)               # (ho3*wo3, 64)

    # ---- flatten (h, w, c) + fc1 + Q head -----------------------------------
    if ho3 * wo3 > 1:
        feat = jnp.concatenate([a3[p:p + 1, :] for p in range(ho3 * wo3)],
                               axis=1)
    else:
        feat = a3                                           # (1, flat)
    hid = mm_bias(feat, f1w_ref, f1b_ref, True)             # (1, 512)
    q_ref[0] = mm_bias(hid, qw_ref, qb_ref, False)          # (1, n_pad) f32


def _dqn_pallas(xsd, p, g):
    n, hw, sd = xsd.shape
    n_pad = p["out_w"].shape[1]

    weights = [p["w1"], p["b1"], p["w2"], p["b2"], p["w3"], p["b3"],
               p["fc1_w"], p["fc1_b"], p["out_w"], p["out_b"]]

    def full2d(a):
        return pl.BlockSpec(a.shape, lambda i: (0, 0))

    flops = 2 * n * (
        g["ho1"] * g["wo1"] * p["w1"].shape[0] * p["w1"].shape[1]
        + g["ho2"] * g["wo2"] * p["w2"].shape[0] * p["w2"].shape[1]
        + g["ho3"] * g["wo3"] * p["w3"].shape[0] * p["w3"].shape[1]
        + p["fc1_w"].shape[0] * p["fc1_w"].shape[1]
        + p["out_w"].shape[0] * p["out_w"].shape[1])
    bytes_accessed = (int(xsd.size) * xsd.dtype.itemsize
                      + sum(int(a.size) * a.dtype.itemsize for a in weights)
                      + n * n_pad * 4)

    return pl.pallas_call(
        functools.partial(_dqn_fused_kernel, g=g),
        out_shape=jax.ShapeDtypeStruct((n, 1, n_pad), jnp.float32),
        grid=(n,),
        in_specs=[pl.BlockSpec((1, hw, sd), lambda i: (i, 0, 0))]
                 + [full2d(a) for a in weights],
        out_specs=pl.BlockSpec((1, 1, n_pad), lambda i: (i, 0, 0)),
        compiler_params=pltpu.CompilerParams(
            dimension_semantics=("parallel",),      # batch shards over TCs (v7x)
            vmem_limit_bytes=VMEM_LIMIT),
        cost_estimate=pl.CostEstimate(flops=flops, transcendentals=0,
                                      bytes_accessed=bytes_accessed),
    )(xsd, *weights)


# ----------------------------------------------------------------------------
# One-time parameter preparation (weight reorder / padding / bf16 cast)
# ----------------------------------------------------------------------------
def prepare_params(params, input_shape, n_actions):
    c, h, w = input_shape
    g = _geometry(input_shape)
    kb1 = g["kb1"]

    # conv1 weight rows ordered (bi, bj, ri, rj, cin) to match the in-kernel
    # space-to-depth patch layout (offset i = S1*bi + ri, j = S1*bj + rj).
    w1 = params["w1"]                                   # (cout, cin, K1, K1)
    cout1 = w1.shape[0]
    w1 = w1.reshape(cout1, c, kb1, S1, kb1, S1)         # (o, c, bi, ri, bj, rj)
    w1 = jnp.transpose(w1, (2, 4, 3, 5, 1, 0))          # (bi, bj, ri, rj, c, o)
    w1 = w1.reshape(kb1 * kb1 * S1 * S1 * c, cout1)

    def conv_w(w_oihw):                                 # rows ordered (i, j, cin)
        cout, cin, kh, kw = w_oihw.shape
        return jnp.transpose(w_oihw, (2, 3, 1, 0)).reshape(kh * kw * cin, cout)

    # fc1: PyTorch flattens conv3 output as (c, h, w); the kernel flattens
    # (h, w, c), so permute the weight rows once (identity when h3 = w3 = 1).
    h3, w3 = g["ho3"], g["wo3"]
    c3 = params["w3"].shape[0]
    fc1 = params["fc1_w"].reshape(c3, h3, w3, 512)
    fc1 = jnp.transpose(fc1, (1, 2, 0, 3)).reshape(h3 * w3 * c3, 512)

    n_pad = _round_up(n_actions, LANE)
    outw = jnp.pad(params["out_w"], ((0, 0), (0, n_pad - n_actions)))
    outb = jnp.pad(params["out_b"], (0, n_pad - n_actions))

    bf16 = lambda a: a.astype(jnp.bfloat16)
    frow = lambda a: a.astype(jnp.float32).reshape(1, -1)
    return {
        "w1": bf16(w1), "b1": frow(params["b1"]),
        "w2": bf16(conv_w(params["w2"])), "b2": frow(params["b2"]),
        "w3": bf16(conv_w(params["w3"])), "b3": frow(params["b3"]),
        "fc1_w": bf16(fc1), "fc1_b": frow(params["fc1_b"]),
        "out_w": bf16(outw), "out_b": frow(outb),
    }


# ----------------------------------------------------------------------------
# DQN forward (matches the PyTorch module's forward())
# ----------------------------------------------------------------------------
def dqn_forward(x_nchw, prep, n_actions):
    n, c, h, w = x_nchw.shape
    g = _geometry((c, h, w))
    # One small XLA prep op: NCHW -> space-to-depth(S1) layout + bf16 cast.
    x = x_nchw.reshape(n, c, g["hb"], S1, g["wb"], S1)
    x = jnp.transpose(x, (0, 2, 4, 3, 5, 1))             # (n, q, p, ri, rj, c)
    xsd = x.reshape(n, g["hb"] * g["wb"], S1 * S1 * c).astype(jnp.bfloat16)
    q = _dqn_pallas(xsd, prep, g)                        # (n, 1, n_pad)
    return q.reshape(n, -1)[:, :n_actions]               # drop head lane padding


# ----------------------------------------------------------------------------
# Deterministic parameter init (shapes from DQN.__init__) + pure-JAX reference
# ----------------------------------------------------------------------------
def init_params(key, n_actions, input_shape):
    c, h, w = input_shape
    h1, w1 = _conv_out(h, 8, 4), _conv_out(w, 8, 4)
    h2, w2 = _conv_out(h1, 4, 2), _conv_out(w1, 4, 2)
    h3, w3 = _conv_out(h2, 3, 1), _conv_out(w2, 3, 1)
    flat = 64 * h3 * w3          # == DQN._get_conv_output(input_shape)
    ks = jax.random.split(key, 10)
    s = 0.05
    return {
        "w1": s * jax.random.normal(ks[0], (32, c, 8, 8), jnp.float32),
        "b1": s * jax.random.normal(ks[1], (32,), jnp.float32),
        "w2": s * jax.random.normal(ks[2], (64, 32, 4, 4), jnp.float32),
        "b2": s * jax.random.normal(ks[3], (64,), jnp.float32),
        "w3": s * jax.random.normal(ks[4], (64, 64, 3, 3), jnp.float32),
        "b3": s * jax.random.normal(ks[5], (64,), jnp.float32),
        # stored as (in, out); equals torch Linear weight transposed
        "fc1_w": s * jax.random.normal(ks[6], (flat, 512), jnp.float32),
        "fc1_b": s * jax.random.normal(ks[7], (512,), jnp.float32),
        "out_w": s * jax.random.normal(ks[8], (512, n_actions), jnp.float32),
        "out_b": s * jax.random.normal(ks[9], (n_actions,), jnp.float32),
    }


def reference_forward(x_nchw, params):
    def conv(x, w, b, stride):
        y = jax.lax.conv_general_dilated(
            x, w, window_strides=(stride, stride), padding="VALID",
            dimension_numbers=("NCHW", "OIHW", "NCHW"))
        return jax.nn.relu(y + b[None, :, None, None])

    x = conv(x_nchw, params["w1"], params["b1"], 4)
    x = conv(x, params["w2"], params["b2"], 2)
    x = conv(x, params["w3"], params["b3"], 1)
    x = x.reshape(x.shape[0], -1)
    x = jax.nn.relu(x @ params["fc1_w"] + params["fc1_b"])
    return x @ params["out_w"] + params["out_b"]


if __name__ == "__main__":
    key = jax.random.PRNGKey(0)
    k_param, k_x = jax.random.split(key)

    n_actions = 6
    # smallest spatial size the conv stack supports: 36 -> 8 -> 3 -> 1
    input_shape = (4, 36, 36)
    batch = 2

    params = init_params(k_param, n_actions, input_shape)
    prep = prepare_params(params, input_shape, n_actions)
    x = jax.random.uniform(k_x, (batch,) + input_shape, dtype=jnp.float32)

    fwd = jax.jit(functools.partial(dqn_forward, n_actions=n_actions))
    out = jax.block_until_ready(fwd(x, prep))

    ref = reference_forward(x, params)
    assert out.shape == (batch, n_actions), out.shape
    # bf16 MXU inputs with f32 accumulation vs pure-f32 reference.
    err = float(jnp.max(jnp.abs(out - ref)))
    assert jnp.allclose(out, ref, rtol=2e-2, atol=2e-2), err

    print("KERNEL_OK")
</pallas_src>

<mosaic_0001>
module attributes {stable_mosaic.version = 11 : i64} {
  func.func @_dqn_fused_kernel(%arg0: i32, %arg1: memref<1x81x64xbf16, #tpu.memory_space<vmem>>, %arg2: memref<256x32xbf16, #tpu.memory_space<vmem>>, %arg3: memref<1x32xf32, #tpu.memory_space<vmem>>, %arg4: memref<512x64xbf16, #tpu.memory_space<vmem>>, %arg5: memref<1x64xf32, #tpu.memory_space<vmem>>, %arg6: memref<576x64xbf16, #tpu.memory_space<vmem>>, %arg7: memref<1x64xf32, #tpu.memory_space<vmem>>, %arg8: memref<64x512xbf16, #tpu.memory_space<vmem>>, %arg9: memref<1x512xf32, #tpu.memory_space<vmem>>, %arg10: memref<512x128xbf16, #tpu.memory_space<vmem>>, %arg11: memref<1x128xf32, #tpu.memory_space<vmem>>, %arg12: memref<1x1x128xf32, #tpu.memory_space<vmem>>) attributes {dimension_semantics = [#tpu.dimension_semantics<parallel>], iteration_bounds = array<i64: 2>, scalar_prefetch = 0 : i64, scratch_operands = 0 : i64, tpu.core_type = #tpu.core_type<tc>, window_params = [{transform_indices = @transform_0, window_bounds = array<i64: 1, 81, 64>}, {pipeline_mode = #tpu.pipeline_mode<synchronous>, transform_indices = @transform_1, window_bounds = array<i64: 256, 32>}, {pipeline_mode = #tpu.pipeline_mode<synchronous>, transform_indices = @transform_2, window_bounds = array<i64: 1, 32>}, {pipeline_mode = #tpu.pipeline_mode<synchronous>, transform_indices = @transform_3, window_bounds = array<i64: 512, 64>}, {pipeline_mode = #tpu.pipeline_mode<synchronous>, transform_indices = @transform_4, window_bounds = array<i64: 1, 64>}, {pipeline_mode = #tpu.pipeline_mode<synchronous>, transform_indices = @transform_5, window_bounds = array<i64: 576, 64>}, {pipeline_mode = #tpu.pipeline_mode<synchronous>, transform_indices = @transform_6, window_bounds = array<i64: 1, 64>}, {pipeline_mode = #tpu.pipeline_mode<synchronous>, transform_indices = @transform_7, window_bounds = array<i64: 64, 512>}, {pipeline_mode = #tpu.pipeline_mode<synchronous>, transform_indices = @transform_8, window_bounds = array<i64: 1, 512>}, {pipeline_mode = #tpu.pipeline_mode<synchronous>, transform_indices = @transform_9, window_bounds = array<i64: 512, 128>}, {pipeline_mode = #tpu.pipeline_mode<synchronous>, transform_indices = @transform_10, window_bounds = array<i64: 1, 128>}, {transform_indices = @transform_11, window_bounds = array<i64: 1, 1, 128>}]} {
    %c0 = arith.constant 0 : index
    %c0_0 = arith.constant 0 : index
    %c0_1 = arith.constant 0 : index
    %0 = vector.load %arg1[%c0, %c0_0, %c0_1] : memref<1x81x64xbf16, #tpu.memory_space<vmem>>, vector<1x81x64xbf16>
    %1 = vector.shape_cast %0 : vector<1x81x64xbf16> to vector<81x64xbf16>
    %2 = vector.extract_strided_slice %1 {offsets = [0, 0], sizes = [8, 64], strides = [1, 1]} : vector<81x64xbf16> to vector<8x64xbf16>
    %3 = vector.extract_strided_slice %1 {offsets = [1, 0], sizes = [8, 64], strides = [1, 1]} : vector<81x64xbf16> to vector<8x64xbf16>
    %4 = vector.extract_strided_slice %1 {offsets = [9, 0], sizes = [8, 64], strides = [1, 1]} : vector<81x64xbf16> to vector<8x64xbf16>
    %5 = vector.extract_strided_slice %1 {offsets = [10, 0], sizes = [8, 64], strides = [1, 1]} : vector<81x64xbf16> to vector<8x64xbf16>
    %6 = tpu.concatenate %2, %3, %4, %5 in 1 : vector<8x64xbf16>, vector<8x64xbf16>, vector<8x64xbf16>, vector<8x64xbf16> -> vector<8x256xbf16>
    %7 = vector.extract_strided_slice %1 {offsets = [9, 0], sizes = [8, 64], strides = [1, 1]} : vector<81x64xbf16> to vector<8x64xbf16>
    %8 = vector.extract_strided_slice %1 {offsets = [10, 0], sizes = [8, 64], strides = [1, 1]} : vector<81x64xbf16> to vector<8x64xbf16>
    %9 = vector.extract_strided_slice %1 {offsets = [18, 0], sizes = [8, 64], strides = [1, 1]} : vector<81x64xbf16> to vector<8x64xbf16>
    %10 = vector.extract_strided_slice %1 {offsets = [19, 0], sizes = [8, 64], strides = [1, 1]} : vector<81x64xbf16> to vector<8x64xbf16>
    %11 = tpu.concatenate %7, %8, %9, %10 in 1 : vector<8x64xbf16>, vector<8x64xbf16>, vector<8x64xbf16>, vector<8x64xbf16> -> vector<8x256xbf16>
    %12 = vector.extract_strided_slice %1 {offsets = [18, 0], sizes = [8, 64], strides = [1, 1]} : vector<81x64xbf16> to vector<8x64xbf16>
    %13 = vector.extract_strided_slice %1 {offsets = [19, 0], sizes = [8, 64], strides = [1, 1]} : vector<81x64xbf16> to vector<8x64xbf16>
    %14 = vector.extract_strided_slice %1 {offsets = [27, 0], sizes = [8, 64], strides = [1, 1]} : vector<81x64xbf16> to vector<8x64xbf16>
    %15 = vector.extract_strided_slice %1 {offsets = [28, 0], sizes = [8, 64], strides = [1, 1]} : vector<81x64xbf16> to vector<8x64xbf16>
    %16 = tpu.concatenate %12, %13, %14, %15 in 1 : vector<8x64xbf16>, vector<8x64xbf16>, vector<8x64xbf16>, vector<8x64xbf16> -> vector<8x256xbf16>
    %17 = vector.extract_strided_slice %1 {offsets = [27, 0], sizes = [8, 64], strides = [1, 1]} : vector<81x64xbf16> to vector<8x64xbf16>
    %18 = vector.extract_strided_slice %1 {offsets = [28, 0], sizes = [8, 64], strides = [1, 1]} : vector<81x64xbf16> to vector<8x64xbf16>
    %19 = vector.extract_strided_slice %1 {offsets = [36, 0], sizes = [8, 64], strides = [1, 1]} : vector<81x64xbf16> to vector<8x64xbf16>
    %20 = vector.extract_strided_slice %1 {offsets = [37, 0], sizes = [8, 64], strides = [1, 1]} : vector<81x64xbf16> to vector<8x64xbf16>
    %21 = tpu.concatenate %17, %18, %19, %20 in 1 : vector<8x64xbf16>, vector<8x64xbf16>, vector<8x64xbf16>, vector<8x64xbf16> -> vector<8x256xbf16>
    %22 = vector.extract_strided_slice %1 {offsets = [36, 0], sizes = [8, 64], strides = [1, 1]} : vector<81x64xbf16> to vector<8x64xbf16>
    %23 = vector.extract_strided_slice %1 {offsets = [37, 0], sizes = [8, 64], strides = [1, 1]} : vector<81x64xbf16> to vector<8x64xbf16>
    %24 = vector.extract_strided_slice %1 {offsets = [45, 0], sizes = [8, 64], strides = [1, 1]} : vector<81x64xbf16> to vector<8x64xbf16>
    %25 = vector.extract_strided_slice %1 {offsets = [46, 0], sizes = [8, 64], strides = [1, 1]} : vector<81x64xbf16> to vector<8x64xbf16>
    %26 = tpu.concatenate %22, %23, %24, %25 in 1 : vector<8x64xbf16>, vector<8x64xbf16>, vector<8x64xbf16>, vector<8x64xbf16> -> vector<8x256xbf16>
    %27 = vector.extract_strided_slice %1 {offsets = [45, 0], sizes = [8, 64], strides = [1, 1]} : vector<81x64xbf16> to vector<8x64xbf16>
    %28 = vector.extract_strided_slice %1 {offsets = [46, 0], sizes = [8, 64], strides = [1, 1]} : vector<81x64xbf16> to vector<8x64xbf16>
    %29 = vector.extract_strided_slice %1 {offsets = [54, 0], sizes = [8, 64], strides = [1, 1]} : vector<81x64xbf16> to vector<8x64xbf16>
    %30 = vector.extract_strided_slice %1 {offsets = [55, 0], sizes = [8, 64], strides = [1, 1]} : vector<81x64xbf16> to vector<8x64xbf16>
    %31 = tpu.concatenate %27, %28, %29, %30 in 1 : vector<8x64xbf16>, vector<8x64xbf16>, vector<8x64xbf16>, vector<8x64xbf16> -> vector<8x256xbf16>
    %32 = vector.extract_strided_slice %1 {offsets = [54, 0], sizes = [8, 64], strides = [1, 1]} : vector<81x64xbf16> to vector<8x64xbf16>
    %33 = vector.extract_strided_slice %1 {offsets = [55, 0], sizes = [8, 64], strides = [1, 1]} : vector<81x64xbf16> to vector<8x64xbf16>
    %34 = vector.extract_strided_slice %1 {offsets = [63, 0], sizes = [8, 64], strides = [1, 1]} : vector<81x64xbf16> to vector<8x64xbf16>
    %35 = vector.extract_strided_slice %1 {offsets = [64, 0], sizes = [8, 64], strides = [1, 1]} : vector<81x64xbf16> to vector<8x64xbf16>
    %36 = tpu.concatenate %32, %33, %34, %35 in 1 : vector<8x64xbf16>, vector<8x64xbf16>, vector<8x64xbf16>, vector<8x64xbf16> -> vector<8x256xbf16>
    %37 = vector.extract_strided_slice %1 {offsets = [63, 0], sizes = [8, 64], strides = [1, 1]} : vector<81x64xbf16> to vector<8x64xbf16>
    %38 = vector.extract_strided_slice %1 {offsets = [64, 0], sizes = [8, 64], strides = [1, 1]} : vector<81x64xbf16> to vector<8x64xbf16>
    %39 = vector.extract_strided_slice %1 {offsets = [72, 0], sizes = [8, 64], strides = [1, 1]} : vector<81x64xbf16> to vector<8x64xbf16>
    %40 = vector.extract_strided_slice %1 {offsets = [73, 0], sizes = [8, 64], strides = [1, 1]} : vector<81x64xbf16> to vector<8x64xbf16>
    %41 = tpu.concatenate %37, %38, %39, %40 in 1 : vector<8x64xbf16>, vector<8x64xbf16>, vector<8x64xbf16>, vector<8x64xbf16> -> vector<8x256xbf16>
    %42 = tpu.concatenate %6, %11, %16, %21, %26, %31, %36, %41 in 0 : vector<8x256xbf16>, vector<8x256xbf16>, vector<8x256xbf16>, vector<8x256xbf16>, vector<8x256xbf16>, vector<8x256xbf16>, vector<8x256xbf16>, vector<8x256xbf16> -> vector<64x256xbf16>
    %c0_2 = arith.constant 0 : index
    %c0_3 = arith.constant 0 : index
    %43 = vector.load %arg2[%c0_2, %c0_3] : memref<256x32xbf16, #tpu.memory_space<vmem>>, vector<256x32xbf16>
    %cst = arith.constant dense<0.000000e+00> : vector<64x32xf32>
    %44 = tpu.matmul %42, %43, %cst {dimension_numbers = #tpu.dot_dimension_numbers<[1], [0], [0], [1], [0, 0, 1, 1], [], []>} : vector<64x256xbf16>, vector<256x32xbf16>, vector<64x32xf32> -> vector<64x32xf32>
    %c0_4 = arith.constant 0 : index
    %c0_5 = arith.constant 0 : index
    %45 = vector.load %arg3[%c0_4, %c0_5] : memref<1x32xf32, #tpu.memory_space<vmem>>, vector<1x32xf32>
    %46 = vector.broadcast %45 : vector<1x32xf32> to vector<64x32xf32>
    %47 = arith.addf %44, %46 : vector<64x32xf32>
    %cst_6 = arith.constant 0.000000e+00 : f32
    %48 = vector.broadcast %cst_6 : f32 to vector<64x32xf32>
    %49 = arith.maximumf %47, %48 : vector<64x32xf32>
    %50 = vector.extract_strided_slice %49 {offsets = [0, 0], sizes = [1, 32], strides = [1, 1]} : vector<64x32xf32> to vector<1x32xf32>
    %51 = vector.extract_strided_slice %49 {offsets = [1, 0], sizes = [1, 32], strides = [1, 1]} : vector<64x32xf32> to vector<1x32xf32>
    %52 = vector.extract_strided_slice %49 {offsets = [2, 0], sizes = [1, 32], strides = [1, 1]} : vector<64x32xf32> to vector<1x32xf32>
    %53 = vector.extract_strided_slice %49 {offsets = [3, 0], sizes = [1, 32], strides = [1, 1]} : vector<64x32xf32> to vector<1x32xf32>
    %54 = vector.extract_strided_slice %49 {offsets = [8, 0], sizes = [1, 32], strides = [1, 1]} : vector<64x32xf32> to vector<1x32xf32>
    %55 = vector.extract_strided_slice %49 {offsets = [9, 0], sizes = [1, 32], strides = [1, 1]} : vector<64x32xf32> to vector<1x32xf32>
    %56 = vector.extract_strided_slice %49 {offsets = [10, 0], sizes = [1, 32], strides = [1, 1]} : vector<64x32xf32> to vector<1x32xf32>
    %57 = vector.extract_strided_slice %49 {offsets = [11, 0], sizes = [1, 32], strides = [1, 1]} : vector<64x32xf32> to vector<1x32xf32>
    %58 = vector.extract_strided_slice %49 {offsets = [16, 0], sizes = [1, 32], strides = [1, 1]} : vector<64x32xf32> to vector<1x32xf32>
    %59 = vector.extract_strided_slice %49 {offsets = [17, 0], sizes = [1, 32], strides = [1, 1]} : vector<64x32xf32> to vector<1x32xf32>
    %60 = vector.extract_strided_slice %49 {offsets = [18, 0], sizes = [1, 32], strides = [1, 1]} : vector<64x32xf32> to vector<1x32xf32>
    %61 = vector.extract_strided_slice %49 {offsets = [19, 0], sizes = [1, 32], strides = [1, 1]} : vector<64x32xf32> to vector<1x32xf32>
    %62 = vector.extract_strided_slice %49 {offsets = [24, 0], sizes = [1, 32], strides = [1, 1]} : vector<64x32xf32> to vector<1x32xf32>
    %63 = vector.extract_strided_slice %49 {offsets = [25, 0], sizes = [1, 32], strides = [1, 1]} : vector<64x32xf32> to vector<1x32xf32>
    %64 = vector.extract_strided_slice %49 {offsets = [26, 0], sizes = [1, 32], strides = [1, 1]} : vector<64x32xf32> to vector<1x32xf32>
    %65 = vector.extract_strided_slice %49 {offsets = [27, 0], sizes = [1, 32], strides = [1, 1]} : vector<64x32xf32> to vector<1x32xf32>
    %66 = tpu.concatenate %50, %51, %52, %53, %54, %55, %56, %57, %58, %59, %60, %61, %62, %63, %64, %65 in 1 : vector<1x32xf32>, vector<1x32xf32>, vector<1x32xf32>, vector<1x32xf32>, vector<1x32xf32>, vector<1x32xf32>, vector<1x32xf32>, vector<1x32xf32>, vector<1x32xf32>, vector<1x32xf32>, vector<1x32xf32>, vector<1x32xf32>, vector<1x32xf32>, vector<1x32xf32>, vector<1x32xf32>, vector<1x32xf32> -> vector<1x512xf32>
    %67 = vector.extract_strided_slice %49 {offsets = [2, 0], sizes = [1, 32], strides = [1, 1]} : vector<64x32xf32> to vector<1x32xf32>
    %68 = vector.extract_strided_slice %49 {offsets = [3, 0], sizes = [1, 32], strides = [1, 1]} : vector<64x32xf32> to vector<1x32xf32>
    %69 = vector.extract_strided_slice %49 {offsets = [4, 0], sizes = [1, 32], strides = [1, 1]} : vector<64x32xf32> to vector<1x32xf32>
    %70 = vector.extract_strided_slice %49 {offsets = [5, 0], sizes = [1, 32], strides = [1, 1]} : vector<64x32xf32> to vector<1x32xf32>
    %71 = vector.extract_strided_slice %49 {offsets = [10, 0], sizes = [1, 32], strides = [1, 1]} : vector<64x32xf32> to vector<1x32xf32>
    %72 = vector.extract_strided_slice %49 {offsets = [11, 0], sizes = [1, 32], strides = [1, 1]} : vector<64x32xf32> to vector<1x32xf32>
    %73 = vector.extract_strided_slice %49 {offsets = [12, 0], sizes = [1, 32], strides = [1, 1]} : vector<64x32xf32> to vector<1x32xf32>
    %74 = vector.extract_strided_slice %49 {offsets = [13, 0], sizes = [1, 32], strides = [1, 1]} : vector<64x32xf32> to vector<1x32xf32>
    %75 = vector.extract_strided_slice %49 {offsets = [18, 0], sizes = [1, 32], strides = [1, 1]} : vector<64x32xf32> to vector<1x32xf32>
    %76 = vector.extract_strided_slice %49 {offsets = [19, 0], sizes = [1, 32], strides = [1, 1]} : vector<64x32xf32> to vector<1x32xf32>
    %77 = vector.extract_strided_slice %49 {offsets = [20, 0], sizes = [1, 32], strides = [1, 1]} : vector<64x32xf32> to vector<1x32xf32>
    %78 = vector.extract_strided_slice %49 {offsets = [21, 0], sizes = [1, 32], strides = [1, 1]} : vector<64x32xf32> to vector<1x32xf32>
    %79 = vector.extract_strided_slice %49 {offsets = [26, 0], sizes = [1, 32], strides = [1, 1]} : vector<64x32xf32> to vector<1x32xf32>
    %80 = vector.extract_strided_slice %49 {offsets = [27, 0], sizes = [1, 32], strides = [1, 1]} : vector<64x32xf32> to vector<1x32xf32>
    %81 = vector.extract_strided_slice %49 {offsets = [28, 0], sizes = [1, 32], strides = [1, 1]} : vector<64x32xf32> to vector<1x32xf32>
    %82 = vector.extract_strided_slice %49 {offsets = [29, 0], sizes = [1, 32], strides = [1, 1]} : vector<64x32xf32> to vector<1x32xf32>
    %83 = tpu.concatenate %67, %68, %69, %70, %71, %72, %73, %74, %75, %76, %77, %78, %79, %80, %81, %82 in 1 : vector<1x32xf32>, vector<1x32xf32>, vector<1x32xf32>, vector<1x32xf32>, vector<1x32xf32>, vector<1x32xf32>, vector<1x32xf32>, vector<1x32xf32>, vector<1x32xf32>, vector<1x32xf32>, vector<1x32xf32>, vector<1x32xf32>, vector<1x32xf32>, vector<1x32xf32>, vector<1x32xf32>, vector<1x32xf32> -> vector<1x512xf32>
    %84 = vector.extract_strided_slice %49 {offsets = [4, 0], sizes = [1, 32], strides = [1, 1]} : vector<64x32xf32> to vector<1x32xf32>
    %85 = vector.extract_strided_slice %49 {offsets = [5, 0], sizes = [1, 32], strides = [1, 1]} : vector<64x32xf32> to vector<1x32xf32>
    %86 = vector.extract_strided_slice %49 {offsets = [6, 0], sizes = [1, 32], strides = [1, 1]} : vector<64x32xf32> to vector<1x32xf32>
    %87 = vector.extract_strided_slice %49 {offsets = [7, 0], sizes = [1, 32], strides = [1, 1]} : vector<64x32xf32> to vector<1x32xf32>
    %88 = vector.extract_strided_slice %49 {offsets = [12, 0], sizes = [1, 32], strides = [1, 1]} : vector<64x32xf32> to vector<1x32xf32>
    %89 = vector.extract_strided_slice %49 {offsets = [13, 0], sizes = [1, 32], strides = [1, 1]} : vector<64x32xf32> to vector<1x32xf32>
    %90 = vector.extract_strided_slice %49 {offsets = [14, 0], sizes = [1, 32], strides = [1, 1]} : vector<64x32xf32> to vector<1x32xf32>
    %91 = vector.extract_strided_slice %49 {offsets = [15, 0], sizes = [1, 32], strides = [1, 1]} : vector<64x32xf32> to vector<1x32xf32>
    %92 = vector.extract_strided_slice %49 {offsets = [20, 0], sizes = [1, 32], strides = [1, 1]} : vector<64x32xf32> to vector<1x32xf32>
    %93 = vector.extract_strided_slice %49 {offsets = [21, 0], sizes = [1, 32], strides = [1, 1]} : vector<64x32xf32> to vector<1x32xf32>
    %94 = vector.extract_strided_slice %49 {offsets = [22, 0], sizes = [1, 32], strides = [1, 1]} : vector<64x32xf32> to vector<1x32xf32>
    %95 = vector.extract_strided_slice %49 {offsets = [23, 0], sizes = [1, 32], strides = [1, 1]} : vector<64x32xf32> to vector<1x32xf32>
    %96 = vector.extract_strided_slice %49 {offsets = [28, 0], sizes = [1, 32], strides = [1, 1]} : vector<64x32xf32> to vector<1x32xf32>
    %97 = vector.extract_strided_slice %49 {offsets = [29, 0], sizes = [1, 32], strides = [1, 1]} : vector<64x32xf32> to vector<1x32xf32>
    %98 = vector.extract_strided_slice %49 {offsets = [30, 0], sizes = [1, 32], strides = [1, 1]} : vector<64x32xf32> to vector<1x32xf32>
    %99 = vector.extract_strided_slice %49 {offsets = [31, 0], sizes = [1, 32], strides = [1, 1]} : vector<64x32xf32> to vector<1x32xf32>
    %100 = tpu.concatenate %84, %85, %86, %87, %88, %89, %90, %91, %92, %93, %94, %95, %96, %97, %98, %99 in 1 : vector<1x32xf32>, vector<1x32xf32>, vector<1x32xf32>, vector<1x32xf32>, vector<1x32xf32>, vector<1x32xf32>, vector<1x32xf32>, vector<1x32xf32>, vector<1x32xf32>, vector<1x32xf32>, vector<1x32xf32>, vector<1x32xf32>, vector<1x32xf32>, vector<1x32xf32>, vector<1x32xf32>, vector<1x32xf32> -> vector<1x512xf32>
    %101 = vector.extract_strided_slice %49 {offsets = [16, 0], sizes = [1, 32], strides = [1, 1]} : vector<64x32xf32> to vector<1x32xf32>
    %102 = vector.extract_strided_slice %49 {offsets = [17, 0], sizes = [1, 32], strides = [1, 1]} : vector<64x32xf32> to vector<1x32xf32>
    %103 = vector.extract_strided_slice %49 {offsets = [18, 0], sizes = [1, 32], strides = [1, 1]} : vector<64x32xf32> to vector<1x32xf32>
    %104 = vector.extract_strided_slice %49 {offsets = [19, 0], sizes = [1, 32], strides = [1, 1]} : vector<64x32xf32> to vector<1x32xf32>
    %105 = vector.extract_strided_slice %49 {offsets = [24, 0], sizes = [1, 32], strides = [1, 1]} : vector<64x32xf32> to vector<1x32xf32>
    %106 = vector.extract_strided_slice %49 {offsets = [25, 0], sizes = [1, 32], strides = [1, 1]} : vector<64x32xf32> to vector<1x32xf32>
    %107 = vector.extract_strided_slice %49 {offsets = [26, 0], sizes = [1, 32], strides = [1, 1]} : vector<64x32xf32> to vector<1x32xf32>
    %108 = vector.extract_strided_slice %49 {offsets = [27, 0], sizes = [1, 32], strides = [1, 1]} : vector<64x32xf32> to vector<1x32xf32>
    %109 = vector.extract_strided_slice %49 {offsets = [32, 0], sizes = [1, 32], strides = [1, 1]} : vector<64x32xf32> to vector<1x32xf32>
    %110 = vector.extract_strided_slice %49 {offsets = [33, 0], sizes = [1, 32], strides = [1, 1]} : vector<64x32xf32> to vector<1x32xf32>
    %111 = vector.extract_strided_slice %49 {offsets = [34, 0], sizes = [1, 32], strides = [1, 1]} : vector<64x32xf32> to vector<1x32xf32>
    %112 = vector.extract_strided_slice %49 {offsets = [35, 0], sizes = [1, 32], strides = [1, 1]} : vector<64x32xf32> to vector<1x32xf32>
    %113 = vector.extract_strided_slice %49 {offsets = [40, 0], sizes = [1, 32], strides = [1, 1]} : vector<64x32xf32> to vector<1x32xf32>
    %114 = vector.extract_strided_slice %49 {offsets = [41, 0], sizes = [1, 32], strides = [1, 1]} : vector<64x32xf32> to vector<1x32xf32>
    %115 = vector.extract_strided_slice %49 {offsets = [42, 0], sizes = [1, 32], strides = [1, 1]} : vector<64x32xf32> to vector<1x32xf32>
    %116 = vector.extract_strided_slice %49 {offsets = [43, 0], sizes = [1, 32], strides = [1, 1]} : vector<64x32xf32> to vector<1x32xf32>
    %117 = tpu.concatenate %101, %102, %103, %104, %105, %106, %107, %108, %109, %110, %111, %112, %113, %114, %115, %116 in 1 : vector<1x32xf32>, vector<1x32xf32>, vector<1x32xf32>, vector<1x32xf32>, vector<1x32xf32>, vector<1x32xf32>, vector<1x32xf32>, vector<1x32xf32>, vector<1x32xf32>, vector<1x32xf32>, vector<1x32xf32>, vector<1x32xf32>, vector<1x32xf32>, vector<1x32xf32>, vector<1x32xf32>, vector<1x32xf32> -> vector<1x512xf32>
    %118 = vector.extract_strided_slice %49 {offsets = [18, 0], sizes = [1, 32], strides = [1, 1]} : vector<64x32xf32> to vector<1x32xf32>
    %119 = vector.extract_strided_slice %49 {offsets = [19, 0], sizes = [1, 32], strides = [1, 1]} : vector<64x32xf32> to vector<1x32xf32>
    %120 = vector.extract_strided_slice %49 {offsets = [20, 0], sizes = [1, 32], strides = [1, 1]} : vector<64x32xf32> to vector<1x32xf32>
    %121 = vector.extract_strided_slice %49 {offsets = [21, 0], sizes = [1, 32], strides = [1, 1]} : vector<64x32xf32> to vector<1x32xf32>
    %122 = vector.extract_strided_slice %49 {offsets = [26, 0], sizes = [1, 32], strides = [1, 1]} : vector<64x32xf32> to vector<1x32xf32>
    %123 = vector.extract_strided_slice %49 {offsets = [27, 0], sizes = [1, 32], strides = [1, 1]} : vector<64x32xf32> to vector<1x32xf32>
    %124 = vector.extract_strided_slice %49 {offsets = [28, 0], sizes = [1, 32], strides = [1, 1]} : vector<64x32xf32> to vector<1x32xf32>
    %125 = vector.extract_strided_slice %49 {offsets = [29, 0], sizes = [1, 32], strides = [1, 1]} : vector<64x32xf32> to vector<1x32xf32>
    %126 = vector.extract_strided_slice %49 {offsets = [34, 0], sizes = [1, 32], strides = [1, 1]} : vector<64x32xf32> to vector<1x32xf32>
    %127 = vector.extract_strided_slice %49 {offsets = [35, 0], sizes = [1, 32], strides = [1, 1]} : vector<64x32xf32> to vector<1x32xf32>
    %128 = vector.extract_strided_slice %49 {offsets = [36, 0], sizes = [1, 32], strides = [1, 1]} : vector<64x32xf32> to vector<1x32xf32>
    %129 = vector.extract_strided_slice %49 {offsets = [37, 0], sizes = [1, 32], strides = [1, 1]} : vector<64x32xf32> to vector<1x32xf32>
    %130 = vector.extract_strided_slice %49 {offsets = [42, 0], sizes = [1, 32], strides = [1, 1]} : vector<64x32xf32> to vector<1x32xf32>
    %131 = vector.extract_strided_slice %49 {offsets = [43, 0], sizes = [1, 32], strides = [1, 1]} : vector<64x32xf32> to vector<1x32xf32>
    %132 = vector.extract_strided_slice %49 {offsets = [44, 0], sizes = [1, 32], strides = [1, 1]} : vector<64x32xf32> to vector<1x32xf32>
    %133 = vector.extract_strided_slice %49 {offsets = [45, 0], sizes = [1, 32], strides = [1, 1]} : vector<64x32xf32> to vector<1x32xf32>
    %134 = tpu.concatenate %118, %119, %120, %121, %122, %123, %124, %125, %126, %127, %128, %129, %130, %131, %132, %133 in 1 : vector<1x32xf32>, vector<1x32xf32>, vector<1x32xf32>, vector<1x32xf32>, vector<1x32xf32>, vector<1x32xf32>, vector<1x32xf32>, vector<1x32xf32>, vector<1x32xf32>, vector<1x32xf32>, vector<1x32xf32>, vector<1x32xf32>, vector<1x32xf32>, vector<1x32xf32>, vector<1x32xf32>, vector<1x32xf32> -> vector<1x512xf32>
    %135 = vector.extract_strided_slice %49 {offsets = [20, 0], sizes = [1, 32], strides = [1, 1]} : vector<64x32xf32> to vector<1x32xf32>
    %136 = vector.extract_strided_slice %49 {offsets = [21, 0], sizes = [1, 32], strides = [1, 1]} : vector<64x32xf32> to vector<1x32xf32>
    %137 = vector.extract_strided_slice %49 {offsets = [22, 0], sizes = [1, 32], strides = [1, 1]} : vector<64x32xf32> to vector<1x32xf32>
    %138 = vector.extract_strided_slice %49 {offsets = [23, 0], sizes = [1, 32], strides = [1, 1]} : vector<64x32xf32> to vector<1x32xf32>
    %139 = vector.extract_strided_slice %49 {offsets = [28, 0], sizes = [1, 32], strides = [1, 1]} : vector<64x32xf32> to vector<1x32xf32>
    %140 = vector.extract_strided_slice %49 {offsets = [29, 0], sizes = [1, 32], strides = [1, 1]} : vector<64x32xf32> to vector<1x32xf32>
    %141 = vector.extract_strided_slice %49 {offsets = [30, 0], sizes = [1, 32], strides = [1, 1]} : vector<64x32xf32> to vector<1x32xf32>
    %142 = vector.extract_strided_slice %49 {offsets = [31, 0], sizes = [1, 32], strides = [1, 1]} : vector<64x32xf32> to vector<1x32xf32>
    %143 = vector.extract_strided_slice %49 {offsets = [36, 0], sizes = [1, 32], strides = [1, 1]} : vector<64x32xf32> to vector<1x32xf32>
    %144 = vector.extract_strided_slice %49 {offsets = [37, 0], sizes = [1, 32], strides = [1, 1]} : vector<64x32xf32> to vector<1x32xf32>
    %145 = vector.extract_strided_slice %49 {offsets = [38, 0], sizes = [1, 32], strides = [1, 1]} : vector<64x32xf32> to vector<1x32xf32>
    %146 = vector.extract_strided_slice %49 {offsets = [39, 0], sizes = [1, 32], strides = [1, 1]} : vector<64x32xf32> to vector<1x32xf32>
    %147 = vector.extract_strided_slice %49 {offsets = [44, 0], sizes = [1, 32], strides = [1, 1]} : vector<64x32xf32> to vector<1x32xf32>
    %148 = vector.extract_strided_slice %49 {offsets = [45, 0], sizes = [1, 32], strides = [1, 1]} : vector<64x32xf32> to vector<1x32xf32>
    %149 = vector.extract_strided_slice %49 {offsets = [46, 0], sizes = [1, 32], strides = [1, 1]} : vector<64x32xf32> to vector<1x32xf32>
    %150 = vector.extract_strided_slice %49 {offsets = [47, 0], sizes = [1, 32], strides = [1, 1]} : vector<64x32xf32> to vector<1x32xf32>
    %151 = tpu.concatenate %135, %136, %137, %138, %139, %140, %141, %142, %143, %144, %145, %146, %147, %148, %149, %150 in 1 : vector<1x32xf32>, vector<1x32xf32>, vector<1x32xf32>, vector<1x32xf32>, vector<1x32xf32>, vector<1x32xf32>, vector<1x32xf32>, vector<1x32xf32>, vector<1x32xf32>, vector<1x32xf32>, vector<1x32xf32>, vector<1x32xf32>, vector<1x32xf32>, vector<1x32xf32>, vector<1x32xf32>, vector<1x32xf32> -> vector<1x512xf32>
    %152 = vector.extract_strided_slice %49 {offsets = [32, 0], sizes = [1, 32], strides = [1, 1]} : vector<64x32xf32> to vector<1x32xf32>
    %153 = vector.extract_strided_slice %49 {offsets = [33, 0], sizes = [1, 32], strides = [1, 1]} : vector<64x32xf32> to vector<1x32xf32>
    %154 = vector.extract_strided_slice %49 {offsets = [34, 0], sizes = [1, 32], strides = [1, 1]} : vector<64x32xf32> to vector<1x32xf32>
    %155 = vector.extract_strided_slice %49 {offsets = [35, 0], sizes = [1, 32], strides = [1, 1]} : vector<64x32xf32> to vector<1x32xf32>
    %156 = vector.extract_strided_slice %49 {offsets = [40, 0], sizes = [1, 32], strides = [1, 1]} : vector<64x32xf32> to vector<1x32xf32>
    %157 = vector.extract_strided_slice %49 {offsets = [41, 0], sizes = [1, 32], strides = [1, 1]} : vector<64x32xf32> to vector<1x32xf32>
    %158 = vector.extract_strided_slice %49 {offsets = [42, 0], sizes = [1, 32], strides = [1, 1]} : vector<64x32xf32> to vector<1x32xf32>
    %159 = vector.extract_strided_slice %49 {offsets = [43, 0], sizes = [1, 32], strides = [1, 1]} : vector<64x32xf32> to vector<1x32xf32>
    %160 = vector.extract_strided_slice %49 {offsets = [48, 0], sizes = [1, 32], strides = [1, 1]} : vector<64x32xf32> to vector<1x32xf32>
    %161 = vector.extract_strided_slice %49 {offsets = [49, 0], sizes = [1, 32], strides = [1, 1]} : vector<64x32xf32> to vector<1x32xf32>
    %162 = vector.extract_strided_slice %49 {offsets = [50, 0], sizes = [1, 32], strides = [1, 1]} : vector<64x32xf32> to vector<1x32xf32>
    %163 = vector.extract_strided_slice %49 {offsets = [51, 0], sizes = [1, 32], strides = [1, 1]} : vector<64x32xf32> to vector<1x32xf32>
    %164 = vector.extract_strided_slice %49 {offsets = [56, 0], sizes = [1, 32], strides = [1, 1]} : vector<64x32xf32> to vector<1x32xf32>
    %165 = vector.extract_strided_slice %49 {offsets = [57, 0], sizes = [1, 32], strides = [1, 1]} : vector<64x32xf32> to vector<1x32xf32>
    %166 = vector.extract_strided_slice %49 {offsets = [58, 0], sizes = [1, 32], strides = [1, 1]} : vector<64x32xf32> to vector<1x32xf32>
    %167 = vector.extract_strided_slice %49 {offsets = [59, 0], sizes = [1, 32], strides = [1, 1]} : vector<64x32xf32> to vector<1x32xf32>
    %168 = tpu.concatenate %152, %153, %154, %155, %156, %157, %158, %159, %160, %161, %162, %163, %164, %165, %166, %167 in 1 : vector<1x32xf32>, vector<1x32xf32>, vector<1x32xf32>, vector<1x32xf32>, vector<1x32xf32>, vector<1x32xf32>, vector<1x32xf32>, vector<1x32xf32>, vector<1x32xf32>, vector<1x32xf32>, vector<1x32xf32>, vector<1x32xf32>, vector<1x32xf32>, vector<1x32xf32>, vector<1x32xf32>, vector<1x32xf32> -> vector<1x512xf32>
    %169 = vector.extract_strided_slice %49 {offsets = [34, 0], sizes = [1, 32], strides = [1, 1]} : vector<64x32xf32> to vector<1x32xf32>
    %170 = vector.extract_strided_slice %49 {offsets = [35, 0], sizes = [1, 32], strides = [1, 1]} : vector<64x32xf32> to vector<1x32xf32>
    %171 = vector.extract_strided_slice %49 {offsets = [36, 0], sizes = [1, 32], strides = [1, 1]} : vector<64x32xf32> to vector<1x32xf32>
    %172 = vector.extract_strided_slice %49 {offsets = [37, 0], sizes = [1, 32], strides = [1, 1]} : vector<64x32xf32> to vector<1x32xf32>
    %173 = vector.extract_strided_slice %49 {offsets = [42, 0], sizes = [1, 32], strides = [1, 1]} : vector<64x32xf32> to vector<1x32xf32>
    %174 = vector.extract_strided_slice %49 {offsets = [43, 0], sizes = [1, 32], strides = [1, 1]} : vector<64x32xf32> to vector<1x32xf32>
    %175 = vector.extract_strided_slice %49 {offsets = [44, 0], sizes = [1, 32], strides = [1, 1]} : vector<64x32xf32> to vector<1x32xf32>
    %176 = vector.extract_strided_slice %49 {offsets = [45, 0], sizes = [1, 32], strides = [1, 1]} : vector<64x32xf32> to vector<1x32xf32>
    %177 = vector.extract_strided_slice %49 {offsets = [50, 0], sizes = [1, 32], strides = [1, 1]} : vector<64x32xf32> to vector<1x32xf32>
    %178 = vector.extract_strided_slice %49 {offsets = [51, 0], sizes = [1, 32], strides = [1, 1]} : vector<64x32xf32> to vector<1x32xf32>
    %179 = vector.extract_strided_slice %49 {offsets = [52, 0], sizes = [1, 32], strides = [1, 1]} : vector<64x32xf32> to vector<1x32xf32>
    %180 = vector.extract_strided_slice %49 {offsets = [53, 0], sizes = [1, 32], strides = [1, 1]} : vector<64x32xf32> to vector<1x32xf32>
    %181 = vector.extract_strided_slice %49 {offsets = [58, 0], sizes = [1, 32], strides = [1, 1]} : vector<64x32xf32> to vector<1x32xf32>
    %182 = vector.extract_strided_slice %49 {offsets = [59, 0], sizes = [1, 32], strides = [1, 1]} : vector<64x32xf32> to vector<1x32xf32>
    %183 = vector.extract_strided_slice %49 {offsets = [60, 0], sizes = [1, 32], strides = [1, 1]} : vector<64x32xf32> to vector<1x32xf32>
    %184 = vector.extract_strided_slice %49 {offsets = [61, 0], sizes = [1, 32], strides = [1, 1]} : vector<64x32xf32> to vector<1x32xf32>
    %185 = tpu.concatenate %169, %170, %171, %172, %173, %174, %175, %176, %177, %178, %179, %180, %181, %182, %183, %184 in 1 : vector<1x32xf32>, vector<1x32xf32>, vector<1x32xf32>, vector<1x32xf32>, vector<1x32xf32>, vector<1x32xf32>, vector<1x32xf32>, vector<1x32xf32>, vector<1x32xf32>, vector<1x32xf32>, vector<1x32xf32>, vector<1x32xf32>, vector<1x32xf32>, vector<1x32xf32>, vector<1x32xf32>, vector<1x32xf32> -> vector<1x512xf32>
    %186 = vector.extract_strided_slice %49 {offsets = [36, 0], sizes = [1, 32], strides = [1, 1]} : vector<64x32xf32> to vector<1x32xf32>
    %187 = vector.extract_strided_slice %49 {offsets = [37, 0], sizes = [1, 32], strides = [1, 1]} : vector<64x32xf32> to vector<1x32xf32>
    %188 = vector.extract_strided_slice %49 {offsets = [38, 0], sizes = [1, 32], strides = [1, 1]} : vector<64x32xf32> to vector<1x32xf32>
    %189 = vector.extract_strided_slice %49 {offsets = [39, 0], sizes = [1, 32], strides = [1, 1]} : vector<64x32xf32> to vector<1x32xf32>
    %190 = vector.extract_strided_slice %49 {offsets = [44, 0], sizes = [1, 32], strides = [1, 1]} : vector<64x32xf32> to vector<1x32xf32>
    %191 = vector.extract_strided_slice %49 {offsets = [45, 0], sizes = [1, 32], strides = [1, 1]} : vector<64x32xf32> to vector<1x32xf32>
    %192 = vector.extract_strided_slice %49 {offsets = [46, 0], sizes = [1, 32], strides = [1, 1]} : vector<64x32xf32> to vector<1x32xf32>
    %193 = vector.extract_strided_slice %49 {offsets = [47, 0], sizes = [1, 32], strides = [1, 1]} : vector<64x32xf32> to vector<1x32xf32>
    %194 = vector.extract_strided_slice %49 {offsets = [52, 0], sizes = [1, 32], strides = [1, 1]} : vector<64x32xf32> to vector<1x32xf32>
    %195 = vector.extract_strided_slice %49 {offsets = [53, 0], sizes = [1, 32], strides = [1, 1]} : vector<64x32xf32> to vector<1x32xf32>
    %196 = vector.extract_strided_slice %49 {offsets = [54, 0], sizes = [1, 32], strides = [1, 1]} : vector<64x32xf32> to vector<1x32xf32>
    %197 = vector.extract_strided_slice %49 {offsets = [55, 0], sizes = [1, 32], strides = [1, 1]} : vector<64x32xf32> to vector<1x32xf32>
    %198 = vector.extract_strided_slice %49 {offsets = [60, 0], sizes = [1, 32], strides = [1, 1]} : vector<64x32xf32> to vector<1x32xf32>
    %199 = vector.extract_strided_slice %49 {offsets = [61, 0], sizes = [1, 32], strides = [1, 1]} : vector<64x32xf32> to vector<1x32xf32>
    %200 = vector.extract_strided_slice %49 {offsets = [62, 0], sizes = [1, 32], strides = [1, 1]} : vector<64x32xf32> to vector<1x32xf32>
    %201 = vector.extract_strided_slice %49 {offsets = [63, 0], sizes = [1, 32], strides = [1, 1]} : vector<64x32xf32> to vector<1x32xf32>
    %202 = tpu.concatenate %186, %187, %188, %189, %190, %191, %192, %193, %194, %195, %196, %197, %198, %199, %200, %201 in 1 : vector<1x32xf32>, vector<1x32xf32>, vector<1x32xf32>, vector<1x32xf32>, vector<1x32xf32>, vector<1x32xf32>, vector<1x32xf32>, vector<1x32xf32>, vector<1x32xf32>, vector<1x32xf32>, vector<1x32xf32>, vector<1x32xf32>, vector<1x32xf32>, vector<1x32xf32>, vector<1x32xf32>, vector<1x32xf32> -> vector<1x512xf32>
    %203 = tpu.concatenate %66, %83, %100, %117, %134, %151, %168, %185, %202 in 0 : vector<1x512xf32>, vector<1x512xf32>, vector<1x512xf32>, vector<1x512xf32>, vector<1x512xf32>, vector<1x512xf32>, vector<1x512xf32>, vector<1x512xf32>, vector<1x512xf32> -> vector<9x512xf32>
    %204 = arith.truncf %203 : vector<9x512xf32> to vector<9x512xbf16>
    %c0_7 = arith.constant 0 : index
    %c0_8 = arith.constant 0 : index
    %205 = vector.load %arg4[%c0_7, %c0_8] : memref<512x64xbf16, #tpu.memory_space<vmem>>, vector<512x64xbf16>
    %cst_9 = arith.constant dense<0.000000e+00> : vector<9x64xf32>
    %206 = tpu.matmul %204, %205, %cst_9 {dimension_numbers = #tpu.dot_dimension_numbers<[1], [0], [0], [1], [0, 0, 1, 1], [], []>} : vector<9x512xbf16>, vector<512x64xbf16>, vector<9x64xf32> -> vector<9x64xf32>
    %c0_10 = arith.constant 0 : index
    %c0_11 = arith.constant 0 : index
    %207 = vector.load %arg5[%c0_10, %c0_11] : memref<1x64xf32, #tpu.memory_space<vmem>>, vector<1x64xf32>
    %208 = vector.broadcast %207 : vector<1x64xf32> to vector<9x64xf32>
    %209 = arith.addf %206, %208 : vector<9x64xf32>
    %cst_12 = arith.constant 0.000000e+00 : f32
    %210 = vector.broadcast %cst_12 : f32 to vector<9x64xf32>
    %211 = arith.maximumf %209, %210 : vector<9x64xf32>
    %212 = vector.extract_strided_slice %211 {offsets = [0, 0], sizes = [1, 64], strides = [1, 1]} : vector<9x64xf32> to vector<1x64xf32>
    %213 = vector.extract_strided_slice %211 {offsets = [1, 0], sizes = [1, 64], strides = [1, 1]} : vector<9x64xf32> to vector<1x64xf32>
    %214 = vector.extract_strided_slice %211 {offsets = [2, 0], sizes = [1, 64], strides = [1, 1]} : vector<9x64xf32> to vector<1x64xf32>
    %215 = vector.extract_strided_slice %211 {offsets = [3, 0], sizes = [1, 64], strides = [1, 1]} : vector<9x64xf32> to vector<1x64xf32>
    %216 = vector.extract_strided_slice %211 {offsets = [4, 0], sizes = [1, 64], strides = [1, 1]} : vector<9x64xf32> to vector<1x64xf32>
    %217 = vector.extract_strided_slice %211 {offsets = [5, 0], sizes = [1, 64], strides = [1, 1]} : vector<9x64xf32> to vector<1x64xf32>
    %218 = vector.extract_strided_slice %211 {offsets = [6, 0], sizes = [1, 64], strides = [1, 1]} : vector<9x64xf32> to vector<1x64xf32>
    %219 = vector.extract_strided_slice %211 {offsets = [7, 0], sizes = [1, 64], strides = [1, 1]} : vector<9x64xf32> to vector<1x64xf32>
    %220 = vector.extract_strided_slice %211 {offsets = [8, 0], sizes = [1, 64], strides = [1, 1]} : vector<9x64xf32> to vector<1x64xf32>
    %221 = tpu.concatenate %212, %213, %214, %215, %216, %217, %218, %219, %220 in 1 : vector<1x64xf32>, vector<1x64xf32>, vector<1x64xf32>, vector<1x64xf32>, vector<1x64xf32>, vector<1x64xf32>, vector<1x64xf32>, vector<1x64xf32>, vector<1x64xf32> -> vector<1x576xf32>
    %222 = arith.truncf %221 : vector<1x576xf32> to vector<1x576xbf16>
    %c0_13 = arith.constant 0 : index
    %c0_14 = arith.constant 0 : index
    %223 = vector.load %arg6[%c0_13, %c0_14] : memref<576x64xbf16, #tpu.memory_space<vmem>>, vector<576x64xbf16>
    %cst_15 = arith.constant dense<0.000000e+00> : vector<1x64xf32>
    %224 = tpu.matmul %222, %223, %cst_15 {dimension_numbers = #tpu.dot_dimension_numbers<[1], [0], [0], [1], [0, 0, 1, 1], [], []>} : vector<1x576xbf16>, vector<576x64xbf16>, vector<1x64xf32> -> vector<1x64xf32>
    %c0_16 = arith.constant 0 : index
    %c0_17 = arith.constant 0 : index
    %225 = vector.load %arg7[%c0_16, %c0_17] : memref<1x64xf32, #tpu.memory_space<vmem>>, vector<1x64xf32>
    %226 = arith.addf %224, %225 : vector<1x64xf32>
    %cst_18 = arith.constant 0.000000e+00 : f32
    %227 = vector.broadcast %cst_18 : f32 to vector<1x64xf32>
    %228 = arith.maximumf %226, %227 : vector<1x64xf32>
    %229 = arith.truncf %228 : vector<1x64xf32> to vector<1x64xbf16>
    %c0_19 = arith.constant 0 : index
    %c0_20 = arith.constant 0 : index
    %230 = vector.load %arg8[%c0_19, %c0_20] : memref<64x512xbf16, #tpu.memory_space<vmem>>, vector<64x512xbf16>
    %cst_21 = arith.constant dense<0.000000e+00> : vector<1x512xf32>
    %231 = tpu.matmul %229, %230, %cst_21 {dimension_numbers = #tpu.dot_dimension_numbers<[1], [0], [0], [1], [0, 0, 1, 1], [], []>} : vector<1x64xbf16>, vector<64x512xbf16>, vector<1x512xf32> -> vector<1x512xf32>
    %c0_22 = arith.constant 0 : index
    %c0_23 = arith.constant 0 : index
    %232 = vector.load %arg9[%c0_22, %c0_23] : memref<1x512xf32, #tpu.memory_space<vmem>>, vector<1x512xf32>
    %233 = arith.addf %231, %232 : vector<1x512xf32>
    %cst_24 = arith.constant 0.000000e+00 : f32
    %234 = vector.broadcast %cst_24 : f32 to vector<1x512xf32>
    %235 = arith.maximumf %233, %234 : vector<1x512xf32>
    %236 = arith.truncf %235 : vector<1x512xf32> to vector<1x512xbf16>
    %c0_25 = arith.constant 0 : index
    %c0_26 = arith.constant 0 : index
    %237 = vector.load %arg10[%c0_25, %c0_26] : memref<512x128xbf16, #tpu.memory_space<vmem>>, vector<512x128xbf16>
    %cst_27 = arith.constant dense<0.000000e+00> : vector<1x128xf32>
    %238 = tpu.matmul %236, %237, %cst_27 {dimension_numbers = #tpu.dot_dimension_numbers<[1], [0], [0], [1], [0, 0, 1, 1], [], []>} : vector<1x512xbf16>, vector<512x128xbf16>, vector<1x128xf32> -> vector<1x128xf32>
    %c0_28 = arith.constant 0 : index
    %c0_29 = arith.constant 0 : index
    %239 = vector.load %arg11[%c0_28, %c0_29] : memref<1x128xf32, #tpu.memory_space<vmem>>, vector<1x128xf32>
    %240 = arith.addf %238, %239 : vector<1x128xf32>
    %c0_30 = arith.constant 0 : index
    %c0_31 = arith.constant 0 : index
    %c0_32 = arith.constant 0 : index
    %241 = vector.load %arg12[%c0_30, %c0_31, %c0_32] : memref<1x1x128xf32, #tpu.memory_space<vmem>>, vector<1x1x128xf32>
    %242 = vector.shape_cast %241 : vector<1x1x128xf32> to vector<1x128xf32>
    %243 = vector.shape_cast %240 : vector<1x128xf32> to vector<1x1x128xf32>
    tpu.vector_store %arg12[%c0_30, %c0_31, %c0_32], %243 {strides = array<i32>} : memref<1x1x128xf32, #tpu.memory_space<vmem>>, vector<1x1x128xf32>,
    return
  }
  func.func @transform_0(%arg0: i32) -> (i32, i32, i32) {
    %c0_i32 = arith.constant 0 : i32
    %c0_i32_0 = arith.constant 0 : i32
    %c0_i32_1 = arith.constant 0 : i32
    return %arg0, %c0_i32, %c0_i32_0 : i32, i32, i32
  }
  func.func @transform_1(%arg0: i32) -> (i32, i32) {
    %c0_i32 = arith.constant 0 : i32
    %c0_i32_0 = arith.constant 0 : i32
    %c0_i32_1 = arith.constant 0 : i32
    return %c0_i32, %c0_i32_0 : i32, i32
  }
  func.func @transform_2(%arg0: i32) -> (i32, i32) {
    %c0_i32 = arith.constant 0 : i32
    %c0_i32_0 = arith.constant 0 : i32
    %c0_i32_1 = arith.constant 0 : i32
    return %c0_i32, %c0_i32_0 : i32, i32
  }
  func.func @transform_3(%arg0: i32) -> (i32, i32) {
    %c0_i32 = arith.constant 0 : i32
    %c0_i32_0 = arith.constant 0 : i32
    %c0_i32_1 = arith.constant 0 : i32
    return %c0_i32, %c0_i32_0 : i32, i32
  }
  func.func @transform_4(%arg0: i32) -> (i32, i32) {
    %c0_i32 = arith.constant 0 : i32
    %c0_i32_0 = arith.constant 0 : i32
    %c0_i32_1 = arith.constant 0 : i32
    return %c0_i32, %c0_i32_0 : i32, i32
  }
  func.func @transform_5(%arg0: i32) -> (i32, i32) {
    %c0_i32 = arith.constant 0 : i32
    %c0_i32_0 = arith.constant 0 : i32
    %c0_i32_1 = arith.constant 0 : i32
    return %c0_i32, %c0_i32_0 : i32, i32
  }
  func.func @transform_6(%arg0: i32) -> (i32, i32) {
    %c0_i32 = arith.constant 0 : i32
    %c0_i32_0 = arith.constant 0 : i32
    %c0_i32_1 = arith.constant 0 : i32
    return %c0_i32, %c0_i32_0 : i32, i32
  }
  func.func @transform_7(%arg0: i32) -> (i32, i32) {
    %c0_i32 = arith.constant 0 : i32
    %c0_i32_0 = arith.constant 0 : i32
    %c0_i32_1 = arith.constant 0 : i32
    return %c0_i32, %c0_i32_0 : i32, i32
  }
  func.func @transform_8(%arg0: i32) -> (i32, i32) {
    %c0_i32 = arith.constant 0 : i32
    %c0_i32_0 = arith.constant 0 : i32
    %c0_i32_1 = arith.constant 0 : i32
    return %c0_i32, %c0_i32_0 : i32, i32
  }
  func.func @transform_9(%arg0: i32) -> (i32, i32) {
    %c0_i32 = arith.constant 0 : i32
    %c0_i32_0 = arith.constant 0 : i32
    %c0_i32_1 = arith.constant 0 : i32
    return %c0_i32, %c0_i32_0 : i32, i32
  }
  func.func @transform_10(%arg0: i32) -> (i32, i32) {
    %c0_i32 = arith.constant 0 : i32
    %c0_i32_0 = arith.constant 0 : i32
    %c0_i32_1 = arith.constant 0 : i32
    return %c0_i32, %c0_i32_0 : i32, i32
  }
  func.func @transform_11(%arg0: i32) -> (i32, i32, i32) {
    %c0_i32 = arith.constant 0 : i32
    %c0_i32_0 = arith.constant 0 : i32
    %c0_i32_1 = arith.constant 0 : i32
    return %arg0, %c0_i32, %c0_i32_0 : i32, i32, i32
  }
}

</mosaic_0001>

<bundles_post_ra>
// kernel: dqn_forward.1
= control target key start
LH: loop header
LB: loop body
LE: loop exit
PB: predicated region body
PF: predicated region fallthrough
CT: control target
= control target key end

     0   :  { %s4147_s0 = inlined_call_operand.vmem [shape: bf16[2,81,64], index: 0, kind: input, shape index: {}]   ;;  %s4148_s1 = inlined_call_operand.vmem [shape: bf16[256,32], index: 1, kind: input, shape index: {}]   ;;  %s4149_s2 = inlined_call_operand.vmem [shape: f32[1,32], index: 2, kind: input, shape index: {}]   ;;  %s4150_s3 = inlined_call_operand.vmem [shape: bf16[512,64], index: 3, kind: input, shape index: {}]   ;;  %s4151_s4 = inlined_call_operand.vmem [shape: f32[1,64], index: 4, kind: input, shape index: {}]   ;;  %s4152_s5 = inlined_call_operand.vmem [shape: bf16[576,64], index: 5, kind: input, shape index: {}]   ;;  %s4153_s6 = inlined_call_operand.vmem [shape: f32[1,64], index: 6, kind: input, shape index: {}]   ;;  %s4154_s7 = inlined_call_operand.vmem [shape: bf16[64,512], index: 7, kind: input, shape index: {}]   ;;  %s4155_s8 = inlined_call_operand.vmem [shape: f32[1,512], index: 8, kind: input, shape index: {}]   ;;  %s4156_s9 = inlined_call_operand.vmem [shape: bf16[512,128], index: 9, kind: input, shape index: {}]   ;;  %s4157_s10 = inlined_call_operand.vmem [shape: f32[1,128], index: 10, kind: input, shape index: {}]   ;;  %s4158_s11 = inlined_call_operand.hbm [shape: f32[2,1,128], index: 11, kind: output, shape index: {}]  }
   0x1   :  { %4161 = sst [smem:[#allocation5_spill]] %s4147_s0 }
   0x2   :  { %16 = vsyncpa [#allocation3], 0 }
   0x3   :  { %18 = vsyncpa [#allocation3 + $0x1], 0  ;;  %s3317_s17 = smov 0   ;;  %s3319_s18 = smov 0  }
   0x4   :  { %s3321_s19 = smov 0   ;;  %s3323_s20 = smov 0  }
   0x5 LB: > { %s3338_s21 = sadd.s32 4294967295, %s3252_s20   ;;  %s2374_s22 = sadd.s32 4294967294, %s3252_s20   ;;  %s3252_s20 = sphi %s3323_s20, %s4169_s20   ;;  %s3248_s19 = sphi %s3321_s19, %s4168_s19   ;;  %s3244_s18 = sphi %s3319_s18, %s4167_s18   ;;  %s3240_s17 = sphi %s3317_s17, %s4166_s17  }
   0x6   : > { %s3342_s23 = sadd.s32 1, %s3252_s20   ;;  %s267_s24 = sadd.s32 1, %s3248_s19 }
   0x7   : > { %s264_s25 = ssub.s32 %s3252_s20, %s3342_s23  ;;  %p277_p0 = scmp.ne.s32.totalorder %s3248_s19, %s3244_s18 }
   0x8   : > { %p265_p1 = scmp.eq.s32.totalorder %s264_s25, 0  ;;  %p278_p2 = scmp.eq.s32.totalorder %s3338_s21, 1 }
   0x9   : > { %p283_p3 = scmp.ne.s32.totalorder %s3244_s18, %s3240_s17  ;;  %p284_p4 = scmp.eq.s32.totalorder %s2374_s22, 1 }
   0xa   : > { %s3353_s26 = scalar_select %p265_p1, %s3248_s19, %s267_s24  }
   0xb   : > { %p3355_p5 = por %p278_p2, %p277_p0  ;;  %p3359_p6 = por %p284_p4, %p283_p3 }
   0xc   : > { %p2377_p7 = scmp.ge.s32.totalorder %s3252_s20, 1  ;;  %p340_p8 = scmp.lt.s32.totalorder %s3252_s20, 3 }
   0xe   : > { %p341_p9 = pnand %p2377_p7, %p340_p8 }
   0xf   : > { %p379_p10 = scmp.lt.s32.totalorder (!%p341_p9), %s3338_s21, 1  ;;  %s4164_s0 = sld [smem:[#allocation5_spill]] (!%p341_p9) }
  0x10   : > { %344 = sbr.rel (%p341_p9) target bundleno = 1171 (0x493), region = 64  ;;  %s4159_s15 = smov (!%p341_p9), 64  }
  0x11   : > { %s3255_s12 = smov (!%p341_p9), 96   ;;  %s4165_s13 = smov (!%p341_p9), 64  }
  0x15   : > { %s380_s29 = scalar_select %p379_p10, %s3338_s21, 1  ;;  %v2921_v32 = vld [vmem:[%s4148_s1 + $0x38] sm:$0xff]  ;;  %v2920_v35 = vld [vmem:[%s4148_s1 + $0x30] sm:$0xff]  ;;  %v2919_v42 = vld [vmem:[%s4148_s1 + $0x28] sm:$0xff]  ;;  %vm423_vm0 = vcmask 523264   ;;  %vm649_vm1 = vcmask 1043456  }
  0x16   : > { %v2929_v34 = vld [vmem:[%s4148_s1 + $0x78] sm:$0xff]  ;;  %812 = vmatpush.bf16.msra.mxu0 %v2921_v32  ;;  %v2928_v38 = vld [vmem:[%s4148_s1 + $0x70] sm:$0xff]  ;;  %v2927_v45 = vld [vmem:[%s4148_s1 + $0x68] sm:$0xff]  ;;  %vm930_vm2 = vcmask 261120   ;;  %vm933_vm3 = vcmask 785408   ;;  %vm1080_vm4 = vcmask 1040384  }
  0x17   : > { %s3080_s30 = smul.u32 44, %s380_s29  ;;  %841 = vmatpush.bf16.msra.mxu1 %v2929_v34  ;;  %v2918_v49 = vld [vmem:[%s4148_s1 + $0x20] sm:$0xff]  ;;  %v2917_v59 = vld [vmem:[%s4148_s1 + $0x18] sm:$0xff]  ;;  %vm1085_vm5 = vcmask 1041408   ;;  %vm1090_vm6 = vcmask 1042432   ;;  %vm1099_vm7 = vcmask 1044480  }
  0x18   : > { %v2926_v54 = vld [vmem:[%s4148_s1 + $0x60] sm:$0xff]  ;;  %vm1104_vm8 = vcmask 1045504   ;;  %vm1109_vm9 = vcmask 1046528  }
  0x19   : > { %s3370_s14 = scalar_lea.vmem %s4164_s0, %s3080_s30  ;;  %s377_s0 = sand.u32 1, %s3244_s18  }
  0x1a   : > { %v386_v0 = vld [vmem:[%s3370_s14 + $0x4] sm:$0xf]  ;;  %v3374_v1 = vld [vmem:[%s3370_s14 + $0x8] sm:$0xff]   ;;  %v3377_v2 = vld [vmem:[%s3370_s14] sm:$0xf]  ;;  %813 = vmatpush.bf16.msra.mxu0 %v2920_v35  ;;  %s378_s22 = scalar_lea.vmem [#allocation2], %s377_s0 }
  0x1b   : > { %v3048_v3 = vunpack.c.l.b16 %v3374_v1  ;;  %v399_v4 = vunpack.c.l.b16 %v386_v0  ;;  %v398_v5 = vunpack.c.l.b16 %v3377_v2  ;;  %v3382_v6 = vld [vmem:[%s3370_s14 + $0xc] sm:$0xff]   ;;  %v3400_v21 = vld [vmem:[%s3370_s14 + $0x14] sm:$0xff]   ;;  %v442_v25 = vrot.slane %v3374_v1, 1  ;;  %v3065_v33 = vld [vmem:[%s3370_s14 + $0x20] sm:$0xff]   ;;  %842 = vmatpush.bf16.msra.mxu1 %v2928_v38  ;;  %s2317_s24 = sshll.u32 %s378_s22, 4  ;;  %s2307_s29 = scalar_lea.sflag [#allocation3], %s377_s0  ;;  %s2318_s24 = int_to_ptr.vmem [resolvable:$true] %s2317_s24 }
  0x1c   : > { %v456_v9 = vshrl.u32 %v3382_v6, 16  ;;  %v458_v10 = vshll.u32 %v3382_v6, 16  ;;  %v3403_v22 = vld [vmem:[%s3370_s14 + $0x10] sm:$0xff]   ;;  %v498_v24 = vshll.u32 %v3400_v21, 16  ;;  %v438_v27 = vshll.u32 %v3374_v1, 16  ;;  %v3449_v46 = vld [vmem:[%s3370_s14 + $0x18] sm:$0xff]  }
  0x1d   : > { %v3384_v7 = vpack.c.b16 %v3048_v3, %v399_v4  ;;  %v400_v8 = vpack.c.b16 %v399_v4, %v398_v5  ;;  %v482_v23 = vrot.slane %v3403_v22, 1  ;;  %v496_v28 = vshrl.u32 %v3400_v21, 16  ;;  %v395_v48 = vld [vmem:[%s3370_s14 + $0x28] sm:$0x1]  ;;  %v2916_v3 = vld [vmem:[%s4148_s1 + $0x10] sm:$0xff]  ;;  %s3256_s14 = smov 32  }
  0x1e   : > { %v460_v15 = vrot.slane %v458_v10, 1  ;;  %v500_v29 = vrot.slane %v498_v24, 1  ;;  %v436_v30 = vshrl.u32 %v3374_v1, 16  ;;  %v440_v31 = vrot.slane %v438_v27, 1  ;;  %814 = vmatpush.bf16.msra.mxu0 %v2919_v42  ;;  %v2915_v10 = vld [vmem:[%s4148_s1 + $0x8] sm:$0xff] }
  0x1f   : > { %v414_v11 = vshrl.u32 %v3384_v7, 16  ;;  %v416_v12 = vshll.u32 %v3384_v7, 16  ;;  %v402_v13 = vshrl.u32 %v400_v8, 16  ;;  %v404_v14 = vshll.u32 %v400_v8, 16  ;;  %843 = vmatpush.bf16.msra.mxu1 %v2927_v45 }
  0x20   : > { %v3390_v18 = vor.u32 %v460_v15, %v456_v9  ;;  %v420_v26 = vrot.slane %v3384_v7, 1  ;;  %v478_v36 = vshll.u32 %v3403_v22, 16  ;;  %v3426_v37 = vor.u32 %v500_v29, %v496_v28  ;;  %v2922_v15 = vld [vmem:[%s4148_s1 + $0x40] sm:$0xff] }
  0x21   : > { %v418_v16 = vrot.slane %v416_v12, 1  ;;  %v406_v17 = vrot.slane %v404_v14, 1  ;;  %v3431_v39 = vor.u32 %v440_v31, %v436_v30  ;;  %v462_v40 = vrot.slane %v3382_v6, 1  ;;  %v2914_v12 = vld [vmem:[%s4148_s1] sm:$0xff]  ;;  %v2923_v14 = vld [vmem:[%s4148_s1 + $0x48] sm:$0xff] }
  0x22   : > { %470 = vrot.lane.b32.xlu2 %v3390_v18, %s4159_s15  ;;  %v3434_v41 = vunpack.c.l.b16 %v3065_v33  ;;  %v476_v43 = vshrl.u32 %v3403_v22, 16  ;;  %v480_v44 = vrot.slane %v478_v36, 1  ;;  %v522_v51 = vrot.slane %v3449_v46, 1  ;;  %815 = vmatpush.bf16.msra.mxu0 %v2918_v49 }
  0x23   : > { %v3392_v19 = vor.u32 %v418_v16, %v414_v11  ;;  %v407_v20 = vor.u32 %v406_v17, %v402_v13  ;;  %v502_v52 = vrot.slane %v3400_v21, 1  ;;  %v518_v53 = vshll.u32 %v3449_v46, 16  ;;  %844 = vmatpush.bf16.msra.mxu1 %v2926_v54  ;;  %v2925_v11 = vld [vmem:[%s4148_s1 + $0x58] sm:$0xff]  ;;  %v2924_v13 = vld [vmem:[%s4148_s1 + $0x50] sm:$0xff] }
  0x24   : > { %v542_v47 = vpack.c.b16 %v3434_v41, %v3434_v41  ;;  %v3457_v50 = vor.u32 %v480_v44, %v476_v43  ;;  %v3465_v57 = vunpack.c.h.b16 %v3065_v33  ;;  %v573_v58 = vunpack.c.l.b16 %v395_v48 }
  0x25   : > { %430 = vrot.lane.b32.xlu0 %v3392_v19, %s4159_s15  ;;  %408 = vrot.lane.b32.xlu1 %v407_v20, %s4159_s15  ;;  %v516_v60 = vshrl.u32 %v3449_v46, 16  ;;  %v520_v61 = vrot.slane %v518_v53, 1 }
  0x26   : > { %v552_v55 = vshrl.u32 %v542_v47, 16  ;;  %v555_v56 = vshll.u32 %v542_v47, 16  ;;  %v574_v0 = vpack.c.b16 %v573_v58, %v3465_v57  ;;  %816 = vmatpush.bf16.msra.mxu0 %v2917_v59  ;;  %v543_v9 = vrot.slane %v542_v47, 5 }
  0x27   : > { %v3479_v4 = vor.u32 %v520_v61, %v516_v60  ;;  %845 = vmatpush.bf16.msra.mxu1 %v2925_v11  ;;  %v3057_v11 = vunpack.c.h.b16 %v3449_v46 }
  0x28   : > { %v554_v62 = vrot.slane %v552_v55, 4  ;;  %v557_v63 = vrot.slane %v555_v56, 5  ;;  %v575_v8 = vrot.slane %v574_v0, 5 }
  0x2a   : > { %483 = vrot.lane.b32.xlu2 %v482_v23, %s4159_s15  ;;  %v558_v5 = vor.u32 %v557_v63, %v554_v62  ;;  %817 = vmatpush.bf16.msra.mxu0 %v2916_v3 }
  0x2b   : > { %846 = vmatpush.bf16.msra.mxu1 %v2924_v13 }
  0x2d   : > { %443 = vrot.lane.b32.xlu0 %v442_v25, %s4159_s15  ;;  %421 = vrot.lane.b32.xlu1 %v420_v26, %s4159_s15 }
  0x2e   : > { %818 = vmatpush.bf16.msra.mxu0 %v2915_v10 }
  0x2f   : > { %847 = vmatpush.bf16.msra.mxu1 %v2923_v14 }
  0x32   : > { %510 = vrot.lane.b32.xlu2 %v3426_v37, %s4159_s15  ;;  %819 = vmatpush.bf16.msra.mxu0 %v2914_v12 }
  0x33   : > { %848 = vmatpush.bf16.msra.mxu1 %v2922_v15 }
  0x35   : > { %450 = vrot.lane.b32.xlu0 %v3431_v39, %s4159_s15  ;;  %463 = vrot.lane.b32.xlu1 %v462_v40, %s4159_s15 }
  0x3a   : > { %503 = vrot.lane.b32.xlu2 %v502_v52, %s4159_s15 }
  0x3d   : > { %490 = vrot.lane.b32.xlu1 %v3457_v50, %s4159_s15  ;;  %523 = vrot.lane.b32.xlu0 %v522_v51, %s4159_s15 }
  0x42   : > { %530 = vrot.lane.b32.xlu2 %v3479_v4, %s4159_s15 }
  0x45   : > { %559 = vrot.lane.b32.xlu0 %v558_v5, %s4159_s15  ;;  %576 = vrot.lane.b32.xlu1 %v575_v8, %s4159_s15 }
  0x4d   : > { %544 = vrot.lane.b32.xlu0 %v543_v9, %s4159_s15 }
  0x7c   : > { %v471_v16 = vpop.permute.xlu2 %470 }
  0x7d   : > { %v486_v30 = vsel %vm423_vm0, %v3382_v6, %v471_v16 }
  0x7e   : > { %v601_v36 = vshrl.u32 %v486_v30, 16  ;;  %v604_v38 = vshll.u32 %v486_v30, 16 }
  0x80   : > { %v603_v44 = vrot.slane %v601_v36, 5  ;;  %v606_v6 = vrot.slane %v604_v38, 6 }
  0x82   : > { %v607_v54 = vor.u32 %v606_v6, %v603_v44 }
  0x84   : > { %v484_v40 = vpop.permute.xlu2 %483 }
  0x85   : > { %v489_v47 = vsel %vm423_vm0, %v3457_v50, %v484_v40 }
  0x86   : > { %v608_v52 = vshrl.u32 %v489_v47, 16  ;;  %v611_v53 = vshll.u32 %v489_v47, 16 }
  0x88   : > { %v613_v58 = vrot.slane %v611_v53, 6 }
  0x8c   : > { %v511_v56 = vpop.permute.xlu2 %510 }
  0x8d   : > { %v526_v60 = vsel %vm423_vm0, %v3400_v21, %v511_v56  ;;  %v563_v21 = vpack.c.b16 %v3465_v57, %v3465_v57 }
  0x8e   : > { %v619_v62 = vshrl.u32 %v526_v60, 16 }
  0x90   : > { %v621_v5 = vrot.slane %v619_v62, 6 }
  0x94   : > { %v504_v16 = vpop.permute.xlu2 %503 }
  0x97   : > { %v431_v17 = vpop.permute.xlu0 %430  ;;  %v409_v20 = vpop.permute.xlu1 %408 }
  0x98   : > { %v446_v23 = vsel %vm423_vm0, %v3384_v7, %v431_v17  ;;  %v426_v28 = vsel %vm423_vm0, %v3377_v2, %v409_v20  ;;  %v534_v17 = vpack.c.b16 %v3434_v41, %v3057_v11 }
  0x99   : > { %v583_v24 = vshrl.u32 %v446_v23, 16  ;;  %v586_v25 = vshll.u32 %v446_v23, 16  ;;  %v565_v23 = vshrl.u32 %v563_v21, 16 }
  0x9a   : > { %v536_v40 = vshrl.u32 %v534_v17, 16 }
  0x9b   : > { %v585_v26 = vrot.slane %v583_v24, 4  ;;  %v588_v27 = vrot.slane %v586_v25, 5  ;;  %v568_v24 = vshll.u32 %v563_v21, 16 }
  0x9d   : > { %v589_v29 = vor.u32 %v588_v27, %v585_v26  ;;  %v509_v26 = vsel %vm423_vm0, %v3426_v37, %v504_v16  ;;  %v567_v27 = vrot.slane %v565_v23, 4 }
  0x9f   : > { %v444_v31 = vpop.permute.xlu0 %443  ;;  %v651_v32 = vsel %vm649_vm1, %v426_v28, %v589_v29  ;;  %v422_v35 = vpop.permute.xlu1 %421  ;;  %v570_v28 = vrot.slane %v568_v24, 5  ;;  %v618_v29 = vrot.slane %v509_v26, 2 }
  0xa0   : > { %v449_v33 = vsel %vm423_vm0, %v3431_v39, %v444_v31  ;;  %820 = vmatmul.bf16.vlgmr.msra.gmra.mxu0 %v651_v32  ;;  %v429_v43 = vsel %vm423_vm0, %v3392_v19, %v422_v35  ;;  %v610_v19 = vrot.slane %v608_v52, 5  ;;  %v531_v32 = vpop.permute.xlu2 %530 }
  0xa1   : > { %v590_v7 = vshrl.u32 %v449_v33, 16  ;;  %v593_v34 = vshll.u32 %v449_v33, 16  ;;  %v571_v41 = vor.u32 %v570_v28, %v567_v27  ;;  %v538_v33 = vshll.u32 %v534_v17, 16 }
  0xa2   : > { %v614_v63 = vor.u32 %v613_v58, %v610_v19  ;;  %v547_v38 = vsel %vm423_vm0, %v3449_v46, %v531_v32 }
  0xa3   : > { %v592_v42 = vrot.slane %v590_v7, 4  ;;  %v595_v2 = vrot.slane %v593_v34, 5 }
  0xa5   : > { %v596_v45 = vor.u32 %v595_v2, %v592_v42  ;;  %v540_v42 = vrot.slane %v538_v33, 1 }
  0xa7   : > { %v654_v39 = vsel %vm649_vm1, %v429_v43, %v596_v45  ;;  %v451_v48 = vpop.permute.xlu0 %450  ;;  %v464_v55 = vpop.permute.xlu1 %463  ;;  %v635_v43 = vrot.slane %v547_v38, 3  ;;  %v541_v6 = vor.u32 %v540_v42, %v536_v40 }
  0xa8   : > { %849 = vmatmul.bf16.vlgmr.msra.gmra.mxu1 %v654_v39  ;;  %v466_v49 = vsel %vm423_vm0, %v3374_v1, %v451_v48  ;;  %v469_v50 = vsel %vm423_vm0, %v3390_v18, %v464_v55  ;;  %v622_v1 = vshll.u32 %v526_v60, 16 }
  0xa9   : > { %v599_v51 = vrot.slane %v466_v49, 1  ;;  %v600_v61 = vrot.slane %v469_v50, 1 }
  0xaa   : > { %v624_v8 = vrot.slane %v622_v1, 7 }
  0xab   : > { %v658_v59 = vsel %vm649_vm1, %v599_v51, %v607_v54  ;;  %v662_v9 = vsel %vm649_vm1, %v600_v61, %v614_v63  ;;  %v3548_v54 = vld [vmem:[%s4149_s2] ss:$0 sm:$0xff] }
  0xac   : > { %v625_v15 = vor.u32 %v624_v8, %v621_v5 }
  0xaf   : > { %v524_v0 = vpop.permute.xlu0 %523  ;;  %v491_v3 = vpop.permute.xlu1 %490 }
  0xb0   : > { %825 = vmatmul.bf16.gmra.mxu0 %v658_v59  ;;  %v506_v10 = vsel %vm423_vm0, %v3403_v22, %v491_v3  ;;  %v529_v18 = vsel %vm423_vm0, %v3479_v4, %v524_v0 }
  0xb1   : > { %v617_v12 = vrot.slane %v506_v10, 2  ;;  %v626_v13 = vshrl.u32 %v529_v18, 16  ;;  %v629_v14 = vshll.u32 %v529_v18, 16 }
  0xb3   : > { %v628_v22 = vrot.slane %v626_v13, 6  ;;  %v631_v25 = vrot.slane %v629_v14, 7  ;;  %v666_v4 = vsel %vm649_vm1, %v617_v12, %v625_v15 }
  0xb5   : > { %v632_v31 = vor.u32 %v631_v25, %v628_v22 }
  0xb7   : > { %v560_v20 = vpop.permute.xlu0 %559  ;;  %v670_v35 = vsel %vm649_vm1, %v618_v29, %v632_v31  ;;  %v577_v36 = vpop.permute.xlu1 %576 }
  0xb8   : > { %854 = vmatmul.bf16.gmra.mxu1 %v662_v9  ;;  %v579_v57 = vsel %vm423_vm0, %v534_v17, %v560_v20  ;;  %v582_v37 = vsel %vm423_vm0, %v571_v41, %v577_v36 }
  0xb9   : > { %v637_v30 = vshrl.u32 %v579_v57, 16  ;;  %v640_v34 = vshll.u32 %v579_v57, 16  ;;  %v643_v44 = vshrl.u32 %v582_v37, 16  ;;  %v646_v48 = vshll.u32 %v582_v37, 16 }
  0xbb   : > { %v639_v7 = vrot.slane %v637_v30, 7  ;;  %v645_v39 = vrot.slane %v643_v44, 7 }
  0xbd   : > { %v642_v2 = vor.u32 %v640_v34, %v639_v7  ;;  %v648_v51 = vor.u32 %v646_v48, %v645_v39 }
  0xbf   : > { %v674_v45 = vsel %vm649_vm1, %v635_v43, %v642_v2  ;;  %v545_v47 = vpop.permute.xlu0 %544 }
  0xc0   : > { %830 = vmatmul.bf16.gmra.mxu0 %v666_v4  ;;  %v550_v49 = vsel %vm423_vm0, %v541_v6, %v545_v47 }
  0xc1   : > { %v636_v52 = vrot.slane %v550_v49, 3 }
  0xc3   : > { %v678_v46 = vsel %vm649_vm1, %v636_v52, %v648_v51 }
  0xc8   : > { %859 = vmatmul.bf16.gmra.mxu1 %v670_v35 }
  0xd0   : > { %835 = vmatmul.bf16.gmra.mxu0 %v674_v45 }
  0xd8   : > { %864 = vmatmul.bf16.gmra.mxu1 %v678_v46 }
 0x11d   : > { %v821_v53 = vpop.f32.mrf.mxu0 }
 0x11e   : > { %v822_v19 = vadd.f32 %v3548_v54, %v821_v53 }
 0x125   : > { %v823_v55 = vpop.f32.mrf.mxu0  ;;  %v850_v56 = vpop.f32.mrf.mxu1 }
 0x126   : > { %v851_v58 = vadd.f32 %v850_v56, %v822_v19  ;;  %v824_v59 = vadd.f32 %v3548_v54, %v823_v55 }
 0x128   : > { %v3552_v50 = vmax.f32 %v851_v58, 0.0 }
 0x12a   : > { %v887_v63 = vrot.slane %v3552_v50, 3  ;;  %v883_v0 = vrot.slane %v3552_v50, 2  ;;  %v879_v8 = vrot.slane %v3552_v50, 1 }
 0x12d   : > { %v826_v60 = vpop.f32.mrf.mxu0  ;;  %v852_v61 = vpop.f32.mrf.mxu1 }
 0x12e   : > { %v853_v62 = vadd.f32 %v852_v61, %v824_v59  ;;  %v827_v13 = vadd.f32 %v3548_v54, %v826_v60 }
 0x130   : > { %v3554_v1 = vmax.f32 %v853_v62, 0.0 }
 0x132   : > { %v900_v3 = vrot.slane %v3554_v1, 3  ;;  %v896_v5 = vrot.slane %v3554_v1, 2  ;;  %v892_v9 = vrot.slane %v3554_v1, 1 }
 0x134   : > { %v3133_v10 = vpack.i.bf16 %v900_v3, %v887_v63  ;;  %v3128_v18 = vpack.i.bf16 %v896_v5, %v883_v0  ;;  %v3123_v11 = vpack.i.bf16 %v892_v9, %v879_v8  ;;  %v2937_v5 = vld [vmem:[%s4150_s3 + $0x38] sm:$0xff]  ;;  %v2936_v9 = vld [vmem:[%s4150_s3 + $0x30] sm:$0xff] }
 0x135   : > { %v828_v21 = vpop.f32.mrf.mxu0  ;;  %v855_v12 = vpop.f32.mrf.mxu1  ;;  %v2945_v8 = vld [vmem:[%s4150_s3 + $0x78] sm:$0xff]  ;;  %1378 = vmatpush.bf16.msra.mxu2 %v2937_v5 }
 0x136   : > { %3134 = vrot.lane.b32.xlu0 %v3133_v10, %s3255_s12  ;;  %3129 = vrot.lane.b32.xlu2 %v3128_v18, %s4165_s13  ;;  %v856_v14 = vadd.f32 %v855_v12, %v827_v13  ;;  %v829_v15 = vadd.f32 %v3548_v54, %v828_v21  ;;  %v2944_v10 = vld [vmem:[%s4150_s3 + $0x70] sm:$0xff]  ;;  %v2935_v18 = vld [vmem:[%s4150_s3 + $0x28] sm:$0xff] }
 0x137   : > { %3124 = vrot.lane.b32.xlu1 %v3123_v11, %s3256_s14  ;;  %1392 = vmatpush.bf16.msra.mxu3 %v2945_v8  ;;  %v2943_v11 = vld [vmem:[%s4150_s3 + $0x68] sm:$0xff]  ;;  %v2934_v21 = vld [vmem:[%s4150_s3 + $0x20] sm:$0xff]  ;;  %v2933_v13 = vld [vmem:[%s4150_s3 + $0x18] sm:$0xff] }
 0x138   : > { %v3567_v16 = vmax.f32 %v856_v14, 0.0  ;;  %v2942_v12 = vld [vmem:[%s4150_s3 + $0x60] sm:$0xff]  ;;  %v2941_v14 = vld [vmem:[%s4150_s3 + $0x58] sm:$0xff] }
 0x139   : > { %1379 = vmatpush.bf16.msra.mxu2 %v2936_v9 }
 0x13a   : > { %v913_v22 = vrot.slane %v3567_v16, 3  ;;  %v909_v25 = vrot.slane %v3567_v16, 2  ;;  %v905_v57 = vrot.slane %v3567_v16, 1 }
 0x13b   : > { %1393 = vmatpush.bf16.msra.mxu3 %v2944_v10 }
 0x13d   : > { %v831_v17 = vpop.f32.mrf.mxu0  ;;  %v857_v20 = vpop.f32.mrf.mxu1  ;;  %1380 = vmatpush.bf16.msra.mxu2 %v2935_v18 }
 0x13e   : > { %v858_v23 = vadd.f32 %v857_v20, %v829_v15  ;;  %v832_v41 = vadd.f32 %v3548_v54, %v831_v17  ;;  %v2932_v15 = vld [vmem:[%s4150_s3 + $0x10] sm:$0xff]  ;;  %v2931_v20 = vld [vmem:[%s4150_s3 + $0x8] sm:$0xff] }
 0x13f   : > { %1394 = vmatpush.bf16.msra.mxu3 %v2943_v11  ;;  %v2940_v17 = vld [vmem:[%s4150_s3 + $0x50] sm:$0xff] }
 0x140   : > { %v3569_v24 = vmax.f32 %v858_v23, 0.0  ;;  %v2939_v23 = vld [vmem:[%s4150_s3 + $0x48] sm:$0xff] }
 0x141   : > { %1381 = vmatpush.bf16.msra.mxu2 %v2934_v21 }
 0x142   : > { %v926_v4 = vrot.slane %v3569_v24, 3  ;;  %v922_v26 = vrot.slane %v3569_v24, 2  ;;  %v918_v27 = vrot.slane %v3569_v24, 1 }
 0x143   : > { %1395 = vmatpush.bf16.msra.mxu3 %v2942_v12 }
 0x144   : > { %v3148_v28 = vpack.i.bf16 %v926_v4, %v913_v22  ;;  %v3143_v29 = vpack.i.bf16 %v922_v26, %v909_v25  ;;  %v3138_v30 = vpack.i.bf16 %v918_v27, %v905_v57  ;;  %v2930_v22 = vld [vmem:[%s4150_s3] sm:$0xff]  ;;  %v2953_v4 = vld [vmem:[%s4150_s3 + $0xb8] sm:$0xff]  ;;  %v2952_v57 = vld [vmem:[%s4150_s3 + $0xb0] sm:$0xff] }
 0x145   : > { %v833_v31 = vpop.f32.mrf.mxu0  ;;  %v860_v32 = vpop.f32.mrf.mxu1  ;;  %1382 = vmatpush.bf16.msra.mxu2 %v2933_v13  ;;  %v2938_v25 = vld [vmem:[%s4150_s3 + $0x40] sm:$0xff]  ;;  %v2961_v26 = vld [vmem:[%s4150_s3 + $0xf8] sm:$0xff]  ;;  %v2960_v27 = vld [vmem:[%s4150_s3 + $0xf0] sm:$0xff] }
 0x146   : > { %3149 = vrot.lane.b32.xlu0 %v3148_v28, %s3255_s12  ;;  %3144 = vrot.lane.b32.xlu2 %v3143_v29, %s4165_s13  ;;  %v861_v33 = vadd.f32 %v860_v32, %v832_v41  ;;  %v834_v7 = vadd.f32 %v3548_v54, %v833_v31  ;;  %v2951_v28 = vld [vmem:[%s4150_s3 + $0xa8] sm:$0xff]  ;;  %v2958_v31 = vld [vmem:[%s4150_s3 + $0xe0] sm:$0xff] }
 0x147   : > { %3139 = vrot.lane.b32.xlu1 %v3138_v30, %s3256_s14  ;;  %1396 = vmatpush.bf16.msra.mxu3 %v2941_v14  ;;  %v2959_v29 = vld [vmem:[%s4150_s3 + $0xe8] sm:$0xff]  ;;  %v2950_v30 = vld [vmem:[%s4150_s3 + $0xa0] sm:$0xff] }
 0x148   : > { %v3582_v34 = vmax.f32 %v861_v33, 0.0 }
 0x149   : > { %1383 = vmatpush.bf16.msra.mxu2 %v2932_v15 }
 0x14a   : > { %v953_v40 = vrot.slane %v3582_v34, 3  ;;  %v949_v42 = vrot.slane %v3582_v34, 2  ;;  %v945_v44 = vrot.slane %v3582_v34, 1 }
 0x14b   : > { %1397 = vmatpush.bf16.msra.mxu3 %v2940_v17 }
 0x14d   : > { %v862_v35 = vpop.f32.mrf.mxu1  ;;  %v836_v38 = vpop.f32.mrf.mxu0  ;;  %1384 = vmatpush.bf16.msra.mxu2 %v2931_v20 }
 0x14e   : > { %v863_v36 = vadd.f32 %v862_v35, %v834_v7  ;;  %v837_v49 = vadd.f32 %v3548_v54, %v836_v38  ;;  %v2949_v35 = vld [vmem:[%s4150_s3 + $0x98] sm:$0xff] }
 0x14f   : > { %1398 = vmatpush.bf16.msra.mxu3 %v2939_v23 }
 0x150   : > { %v3584_v37 = vmax.f32 %v863_v36, 0.0  ;;  %v2957_v36 = vld [vmem:[%s4150_s3 + $0xd8] sm:$0xff] }
 0x151   : > { %1385 = vmatpush.bf16.msra.mxu2 %v2930_v22 }
 0x152   : > { %v966_v2 = vrot.slane %v3584_v37, 3  ;;  %v962_v43 = vrot.slane %v3584_v37, 2  ;;  %v958_v6 = vrot.slane %v3584_v37, 1 }
 0x153   : > { %1399 = vmatpush.bf16.msra.mxu3 %v2938_v25 }
 0x154   : > { %v3163_v45 = vpack.i.bf16 %v966_v2, %v953_v40  ;;  %v3158_v47 = vpack.i.bf16 %v962_v43, %v949_v42  ;;  %v3153_v39 = vpack.i.bf16 %v958_v6, %v945_v44 }
 0x155   : > { %v865_v48 = vpop.f32.mrf.mxu1  ;;  %v838_v51 = vpop.f32.mrf.mxu0  ;;  %1406 = vmatpush.bf16.msrb.mxu2 %v2953_v4 }
 0x156   : > { %3164 = vrot.lane.b32.xlu0 %v3163_v45, %s3255_s12  ;;  %3159 = vrot.lane.b32.xlu2 %v3158_v47, %s4165_s13  ;;  %v866_v52 = vadd.f32 %v865_v48, %v837_v49  ;;  %v839_v46 = vadd.f32 %v3548_v54, %v838_v51  ;;  %v2948_v47 = vld [vmem:[%s4150_s3 + $0x90] sm:$0xff] }
 0x157   : > { %3154 = vrot.lane.b32.xlu1 %v3153_v39, %s3256_s14  ;;  %1420 = vmatpush.bf16.msrb.mxu3 %v2961_v26  ;;  %v2956_v39 = vld [vmem:[%s4150_s3 + $0xd0] sm:$0xff] }
 0x158   : > { %v3597_v53 = vmax.f32 %v866_v52, 0.0 }
 0x159   : > { %1407 = vmatpush.bf16.msrb.mxu2 %v2952_v57 }
 0x15a   : > { %v985_v58 = vrot.slane %v3597_v53, 3  ;;  %v981_v59 = vrot.slane %v3597_v53, 2  ;;  %v977_v62 = vrot.slane %v3597_v53, 1 }
 0x15b   : > { %1421 = vmatpush.bf16.msrb.mxu3 %v2960_v27 }
 0x15d   : > { %v867_v55 = vpop.f32.mrf.mxu1  ;;  %1408 = vmatpush.bf16.msrb.mxu2 %v2951_v28 }
 0x15e   : > { %v868_v56 = vadd.f32 %v867_v55, %v839_v46  ;;  %v2947_v55 = vld [vmem:[%s4150_s3 + $0x88] sm:$0xff] }
 0x15f   : > { %1422 = vmatpush.bf16.msrb.mxu3 %v2959_v29 }
 0x160   : > { %v3599_v19 = vmax.f32 %v868_v56, 0.0  ;;  %v2955_v56 = vld [vmem:[%s4150_s3 + $0xc8] sm:$0xff] }
 0x161   : > { %1409 = vmatpush.bf16.msrb.mxu2 %v2950_v30 }
 0x162   : > { %v998_v60 = vrot.slane %v3599_v19, 3  ;;  %v994_v61 = vrot.slane %v3599_v19, 2  ;;  %v990_v63 = vrot.slane %v3599_v19, 1 }
 0x163   : > { %1423 = vmatpush.bf16.msrb.mxu3 %v2958_v31 }
 0x164   : > { %v3178_v0 = vpack.i.bf16 %v998_v60, %v985_v58  ;;  %v3173_v54 = vpack.i.bf16 %v994_v61, %v981_v59  ;;  %v3168_v3 = vpack.i.bf16 %v990_v63, %v977_v62 }
 0x165   : > { %1410 = vmatpush.bf16.msrb.mxu2 %v2949_v35 }
 0x166   : > { %3179 = vrot.lane.b32.xlu0 %v3178_v0, %s3255_s12  ;;  %3174 = vrot.lane.b32.xlu2 %v3173_v54, %s4165_s13  ;;  %v2954_v0 = vld [vmem:[%s4150_s3 + $0xc0] sm:$0xff] }
 0x167   : > { %3169 = vrot.lane.b32.xlu1 %v3168_v3, %s3256_s14  ;;  %1424 = vmatpush.bf16.msrb.mxu3 %v2957_v36  ;;  %s3210_s14 = scalar_lea.hbm %s4158_s11, 2 }
 0x169   : > { %1411 = vmatpush.bf16.msrb.mxu2 %v2948_v47 }
 0x16b   : > { %1425 = vmatpush.bf16.msrb.mxu3 %v2956_v39 }
 0x16d   : > { %1412 = vmatpush.bf16.msrb.mxu2 %v2947_v55 }
 0x16f   : > { %1426 = vmatpush.bf16.msrb.mxu3 %v2955_v56 }
 0x173   : > { %1427 = vmatpush.bf16.msrb.mxu3 %v2954_v0 }
 0x190   : > { %v3130_v41 = vpop.permute.xlu2 %3129 }
 0x191   : > { %v3132_v43 = vunpack.i.h.bf16 %v3130_v41  ;;  %v3131_v44 = vunpack.i.l.bf16 %v3130_v41 }
 0x1a0   : > { %v3145_v48 = vpop.permute.xlu2 %3144 }
 0x1a1   : > { %v3147_v58 = vunpack.i.h.bf16 %v3145_v48  ;;  %v3146_v59 = vunpack.i.l.bf16 %v3145_v48 }
 0x1a8   : > { %v3135_v38 = vpop.permute.xlu0 %3134 }
 0x1a9   : > { %v3125_v32 = vpop.permute.xlu1 %3124  ;;  %v3136_v51 = vunpack.i.l.bf16 %v3135_v38 }
 0x1aa   : > { %v3127_v33 = vunpack.i.h.bf16 %v3125_v32  ;;  %v3126_v7 = vunpack.i.l.bf16 %v3125_v32 }
 0x1ac   : > { %v935_v40 = vsel %vm930_vm2, %v3554_v1, %v3127_v33  ;;  %v931_v42 = vsel %vm930_vm2, %v3552_v50, %v3126_v7  ;;  %v3137_v50 = vunpack.i.h.bf16 %v3135_v38 }
 0x1ad   : > { %v936_v1 = vsel %vm423_vm0, %v935_v40, %v3132_v43  ;;  %v932_v49 = vsel %vm423_vm0, %v931_v42, %v3131_v44 }
 0x1ae   : > { %v937_v61 = vsel %vm933_vm3, %v936_v1, %v3137_v50  ;;  %v934_v62 = vsel %vm933_vm3, %v932_v49, %v3136_v51 }
 0x1af   : > { %v1013_v5 = vrot.slane %v937_v61, 1  ;;  %v1012_v8 = vrot.slane %v934_v62, 1  ;;  %v1021_v18 = vrot.slane %v937_v61, 2  ;;  %v1020_v11 = vrot.slane %v934_v62, 2 }
 0x1b0   : > { %v3160_v15 = vpop.permute.xlu2 %3159 }
 0x1b1   : > { %v1082_v21 = vsel %vm1080_vm4, %v937_v61, %v1013_v5  ;;  %v1081_v12 = vsel %vm1080_vm4, %v934_v62, %v1012_v8  ;;  %v3162_v29 = vunpack.i.h.bf16 %v3160_v15  ;;  %v3161_v30 = vunpack.i.l.bf16 %v3160_v15 }
 0x1b2   : > { %v1086_v22 = vsel %vm1085_vm5, %v1081_v12, %v1020_v11  ;;  %v1087_v4 = vsel %vm1085_vm5, %v1082_v21, %v1021_v18 }
 0x1b8   : > { %v3150_v60 = vpop.permute.xlu0 %3149 }
 0x1b9   : > { %v3140_v2 = vpop.permute.xlu1 %3139  ;;  %v3152_v54 = vunpack.i.h.bf16 %v3150_v60  ;;  %v3151_v3 = vunpack.i.l.bf16 %v3150_v60 }
 0x1ba   : > { %v3142_v6 = vunpack.i.h.bf16 %v3140_v2  ;;  %v3141_v45 = vunpack.i.l.bf16 %v3140_v2 }
 0x1bc   : > { %v941_v52 = vsel %vm930_vm2, %v3569_v24, %v3142_v6  ;;  %v938_v46 = vsel %vm930_vm2, %v3567_v16, %v3141_v45  ;;  %v2946_v16 = vld [vmem:[%s4150_s3 + $0x80] sm:$0xff] }
 0x1bd   : > { %v942_v24 = vsel %vm423_vm0, %v941_v52, %v3147_v58  ;;  %v939_v63 = vsel %vm423_vm0, %v938_v46, %v3146_v59  ;;  %1413 = vmatpush.bf16.msrb.mxu2 %v2946_v16 }
 0x1be   : > { %v3721_v9 = vsel %vm933_vm3, %v942_v24, %v3152_v54  ;;  %v3724_v10 = vsel %vm933_vm3, %v939_v63, %v3151_v3 }
 0x1bf   : > { %v1030_v13 = vrot.slane %v3724_v10, 5  ;;  %v1031_v14 = vrot.slane %v3721_v9, 5  ;;  %v1038_v23 = vrot.slane %v3724_v10, 6  ;;  %v1039_v25 = vrot.slane %v3721_v9, 6 }
 0x1c0   : > { %v1046_v2 = vrot.slane %v3724_v10, 7  ;;  %v1047_v43 = vrot.slane %v3721_v9, 7  ;;  %v1015_v50 = vrot.slane %v3721_v9, 1  ;;  %v1014_v51 = vrot.slane %v3724_v10, 1  ;;  %v3175_v63 = vpop.permute.xlu2 %3174 }
 0x1c1   : > { %v1091_v27 = vsel %vm1090_vm6, %v1086_v22, %v1030_v13  ;;  %v1092_v28 = vsel %vm1090_vm6, %v1087_v4, %v1031_v14  ;;  %v1023_v58 = vrot.slane %v3721_v9, 2  ;;  %v1022_v59 = vrot.slane %v3724_v10, 2 }
 0x1c2   : > { %v1095_v36 = vsel %vm649_vm1, %v1091_v27, %v1038_v23  ;;  %v1096_v38 = vsel %vm649_vm1, %v1092_v28, %v1039_v25  ;;  %v1083_v61 = vsel %vm1080_vm4, %v3724_v10, %v1014_v51  ;;  %v1084_v24 = vsel %vm1080_vm4, %v3721_v9, %v1015_v50  ;;  %v2991_v50 = vld [vmem:[%s4152_s5 + $0xe8] sm:$0xff]  ;;  %v3189_v51 = vld [vmem:[%s4151_s4] ss:$0 sm:$0xff] }
 0x1c3   : > { %v1100_v6 = vsel %vm1099_vm7, %v1095_v36, %v1046_v2  ;;  %v1101_v47 = vsel %vm1099_vm7, %v1096_v38, %v1047_v43  ;;  %v1088_v3 = vsel %vm1085_vm5, %v1083_v61, %v1022_v59  ;;  %v1089_v8 = vsel %vm1085_vm5, %v1084_v24, %v1023_v58  ;;  %v2977_v2 = vld [vmem:[%s4152_s5 + $0x78] sm:$0xff]  ;;  %v2974_v58 = vld [vmem:[%s4152_s5 + $0x60] sm:$0xff] }
 0x1c4   : > { %v3177_v10 = vunpack.i.h.bf16 %v3175_v63  ;;  %v3176_v13 = vunpack.i.l.bf16 %v3175_v63  ;;  %1773 = vmatpush.bf16.msrb.mxu1 %v2977_v2  ;;  %v2982_v59 = vld [vmem:[%s4152_s5 + $0xa0] sm:$0xff]  ;;  %v2965_v24 = vld [vmem:[%s4152_s5 + $0x18] sm:$0xff] }
 0x1c5   : > { %v2981_v63 = vld [vmem:[%s4152_s5 + $0x98] sm:$0xff] }
 0x1c8   : > { %v3165_v17 = vpop.permute.xlu0 %3164 }
 0x1c9   : > { %v3155_v20 = vpop.permute.xlu1 %3154  ;;  %v3167_v31 = vunpack.i.h.bf16 %v3165_v17  ;;  %v3166_v32 = vunpack.i.l.bf16 %v3165_v17 }
 0x1ca   : > { %v3157_v26 = vunpack.i.h.bf16 %v3155_v20  ;;  %v3156_v57 = vunpack.i.l.bf16 %v3155_v20 }
 0x1cc   : > { %v973_v41 = vsel %vm930_vm2, %v3584_v37, %v3157_v26  ;;  %v970_v33 = vsel %vm930_vm2, %v3582_v34, %v3156_v57 }
 0x1cd   : > { %v974_v7 = vsel %vm423_vm0, %v973_v41, %v3162_v29  ;;  %v971_v35 = vsel %vm423_vm0, %v970_v33, %v3161_v30 }
 0x1ce   : > { %v975_v40 = vsel %vm933_vm3, %v974_v7, %v3167_v31  ;;  %v972_v42 = vsel %vm933_vm3, %v971_v35, %v3166_v32 }
 0x1cf   : > { %v1056_v37 = vrot.slane %v972_v42, 2  ;;  %v1064_v44 = vrot.slane %v972_v42, 3  ;;  %v1057_v34 = vrot.slane %v975_v40, 2  ;;  %v1065_v45 = vrot.slane %v975_v40, 3 }
 0x1d0   : > { %v1072_v39 = vrot.slane %v972_v42, 4  ;;  %v1073_v1 = vrot.slane %v975_v40, 4  ;;  %v1032_v60 = vrot.slane %v972_v42, 5  ;;  %v1033_v62 = vrot.slane %v975_v40, 5 }
 0x1d1   : > { %v1105_v48 = vsel %vm1104_vm8, %v1100_v6, %v1056_v37  ;;  %v1106_v49 = vsel %vm1104_vm8, %v1101_v47, %v1057_v34  ;;  %v1040_v54 = vrot.slane %v972_v42, 6  ;;  %v1041_v5 = vrot.slane %v975_v40, 6  ;;  %v2993_v34 = vld [vmem:[%s4152_s5 + $0xf8] sm:$0xff]  ;;  %v2968_v6 = vld [vmem:[%s4152_s5 + $0x30] sm:$0xff] }
 0x1d2   : > { %v1110_v52 = vsel %vm1109_vm9, %v1105_v48, %v1064_v44  ;;  %v1111_v46 = vsel %vm1109_vm9, %v1106_v49, %v1065_v45  ;;  %v1093_v21 = vsel %vm1090_vm6, %v1088_v3, %v1032_v60  ;;  %v1094_v12 = vsel %vm1090_vm6, %v1089_v8, %v1033_v62  ;;  %v2985_v44 = vld [vmem:[%s4152_s5 + $0xb8] sm:$0xff]  ;;  %v2976_v45 = vld [vmem:[%s4152_s5 + $0x70] sm:$0xff]  ;;  %v2967_v48 = vld [vmem:[%s4152_s5 + $0x28] sm:$0xff] }
 0x1d3   : > { %v1114_v55 = vpack.c.bf16 %v1072_v39, %v1110_v52  ;;  %v1115_v56 = vpack.c.bf16 %v1073_v1, %v1111_v46  ;;  %v1097_v22 = vsel %vm649_vm1, %v1093_v21, %v1040_v54  ;;  %v1098_v25 = vsel %vm649_vm1, %v1094_v12, %v1041_v5  ;;  %v2984_v47 = vld [vmem:[%s4152_s5 + $0xb0] sm:$0xff]  ;;  %1774 = vmatpush.bf16.msrb.mxu1 %v2976_v45  ;;  %v2975_v1 = vld [vmem:[%s4152_s5 + $0x68] sm:$0xff]  ;;  %v2990_v60 = vld [vmem:[%s4152_s5 + $0xe0] sm:$0xff] }
 0x1d4   : > { %v1048_v26 = vrot.slane %v972_v42, 7  ;;  %v1049_v27 = vrot.slane %v975_v40, 7  ;;  %v2969_v42 = vld [vmem:[%s4152_s5 + $0x38] sm:$0xff]  ;;  %v2992_v39 = vld [vmem:[%s4152_s5 + $0xf0] sm:$0xff]  ;;  %v2983_v49 = vld [vmem:[%s4152_s5 + $0xa8] sm:$0xff] }
 0x1d5   : > { %1386 = vmatmul.bf16.vlgmr.msra.gmra.mxu2 %v1114_v55  ;;  %1400 = vmatmul.bf16.vlgmr.msra.gmra.mxu3 %v1115_v56  ;;  %v2966_v56 = vld [vmem:[%s4152_s5 + $0x20] sm:$0xff]  ;;  %v2980_v8 = vld [vmem:[%s4152_s5 + $0x90] sm:$0xff]  ;;  %v2979_v12 = vld [vmem:[%s4152_s5 + $0x88] sm:$0xff] }
 0x1d6   : > { %v1102_v30 = vsel %vm1099_vm7, %v1097_v22, %v1048_v26  ;;  %v1103_v31 = vsel %vm1099_vm7, %v1098_v25, %v1049_v27  ;;  %1760 = vmatpush.bf16.msrb.mxu0 %v2969_v42  ;;  %1786 = vmatpush.bf16.msra.mxu2 %v2985_v44  ;;  %v2986_v22 = vld [vmem:[%s4152_s5 + $0xc0] sm:$0xff]  ;;  %v2973_v25 = vld [vmem:[%s4152_s5 + $0x58] sm:$0xff]  ;;  %v2972_v26 = vld [vmem:[%s4152_s5 + $0x50] sm:$0xff] }
 0x1d7   : > { %1799 = vmatpush.bf16.msra.mxu3 %v2993_v34  ;;  %1775 = vmatpush.bf16.msrb.mxu1 %v2975_v1  ;;  %v2971_v27 = vld [vmem:[%s4152_s5 + $0x48] sm:$0xff] }
 0x1d8   : > { %v3180_v16 = vpop.permute.xlu0 %3179 }
 0x1d9   : > { %v3170_v0 = vpop.permute.xlu1 %3169  ;;  %v3182_v14 = vunpack.i.h.bf16 %v3180_v16  ;;  %v3181_v15 = vunpack.i.l.bf16 %v3180_v16  ;;  %v2989_v16 = vld [vmem:[%s4152_s5 + $0xd8] sm:$0xff] }
 0x1da   : > { %v3172_v18 = vunpack.i.h.bf16 %v3170_v0  ;;  %v3171_v11 = vunpack.i.l.bf16 %v3170_v0  ;;  %1761 = vmatpush.bf16.msrb.mxu0 %v2968_v6  ;;  %1787 = vmatpush.bf16.msra.mxu2 %v2984_v47 }
 0x1db   : > { %1800 = vmatpush.bf16.msra.mxu3 %v2992_v39  ;;  %1776 = vmatpush.bf16.msrb.mxu1 %v2974_v58  ;;  %v2766_v58 = vld [vmem:[%s4154_s7 + $0x60] sm:$0xf] }
 0x1dc   : > { %v1005_v9 = vsel %vm930_vm2, %v3599_v19, %v3172_v18  ;;  %v1002_v17 = vsel %vm930_vm2, %v3597_v53, %v3171_v11  ;;  %v2988_v18 = vld [vmem:[%s4152_s5 + $0xd0] sm:$0xff] }
 0x1dd   : > { %v1006_v20 = vsel %vm423_vm0, %v1005_v9, %v3177_v10  ;;  %v1003_v23 = vsel %vm423_vm0, %v1002_v17, %v3176_v13  ;;  %v2987_v10 = vld [vmem:[%s4152_s5 + $0xc8] sm:$0xff] }
 0x1de   : > { %v1004_v4 = vsel %vm933_vm3, %v1003_v23, %v3181_v15  ;;  %v1007_v57 = vsel %vm933_vm3, %v1006_v20, %v3182_v14  ;;  %1762 = vmatpush.bf16.msrb.mxu0 %v2967_v48  ;;  %1788 = vmatpush.bf16.msra.mxu2 %v2983_v49  ;;  %v2964_v20 = vld [vmem:[%s4152_s5 + $0x10] sm:$0xff]  ;;  %v2978_v23 = vld [vmem:[%s4152_s5 + $0x80] sm:$0xff] }
 0x1df   : > { %v1058_v28 = vrot.slane %v1004_v4, 2  ;;  %v1066_v29 = vrot.slane %v1004_v4, 3  ;;  %v1059_v19 = vrot.slane %v1007_v57, 2  ;;  %v1067_v53 = vrot.slane %v1007_v57, 3  ;;  %1801 = vmatpush.bf16.msra.mxu3 %v2991_v50  ;;  %1777 = vmatpush.bf16.msrb.mxu1 %v2973_v25  ;;  %v3010_v50 = vld [vmem:[%s4154_s7 + $0x64] sm:$0xf] }
 0x1e0   : > { %v1074_v32 = vrot.slane %v1004_v4, 4  ;;  %v1075_v33 = vrot.slane %v1007_v57, 4  ;;  %v2963_v4 = vld [vmem:[%s4152_s5 + $0x8] sm:$0xff]  ;;  %v2962_v57 = vld [vmem:[%s4152_s5] sm:$0xff] }
 0x1e1   : > { %v1107_v41 = vsel %vm1104_vm8, %v1102_v30, %v1058_v28  ;;  %v1108_v7 = vsel %vm1104_vm8, %v1103_v31, %v1059_v19  ;;  %v2970_v28 = vld [vmem:[%s4152_s5 + $0x40] sm:$0xff]  ;;  %v2996_v19 = vld [vmem:[%s4152_s5 + $0x110] sm:$0xff]  ;;  %v3003_v25 = vld [vmem:[%s4154_s7 + $0x2c] sm:$0xf] }
 0x1e2   : > { %v1112_v35 = vsel %vm1109_vm9, %v1107_v41, %v1066_v29  ;;  %v1113_v36 = vsel %vm1109_vm9, %v1108_v7, %v1067_v53  ;;  %1763 = vmatpush.bf16.msrb.mxu0 %v2966_v56  ;;  %1789 = vmatpush.bf16.msra.mxu2 %v2982_v59  ;;  %v2997_v29 = vld [vmem:[%s4152_s5 + $0x118] sm:$0xff]  ;;  %v2995_v53 = vld [vmem:[%s4152_s5 + $0x108] sm:$0xff]  ;;  %v3012_v59 = vld [vmem:[%s4154_s7 + $0x6c] sm:$0xf0] }
 0x1e3   : > { %v1116_v38 = vpack.c.bf16 %v1074_v32, %v1112_v35  ;;  %v1117_v40 = vpack.c.bf16 %v1075_v33, %v1113_v36  ;;  %1802 = vmatpush.bf16.msra.mxu3 %v2990_v60  ;;  %1778 = vmatpush.bf16.msrb.mxu1 %v2972_v26  ;;  %v3011_v60 = vld [vmem:[%s4154_s7 + $0x6c] sm:$0xf] }
 0x1e5   : > { %1414 = vmatmul.bf16.vlgmr.msrb.gmra.mxu2 %v1116_v38  ;;  %1428 = vmatmul.bf16.vlgmr.msrb.gmra.mxu3 %v1117_v40  ;;  %v2994_v40 = vld [vmem:[%s4152_s5 + $0x100] sm:$0xff] }
 0x1e6   : > { %1764 = vmatpush.bf16.msrb.mxu0 %v2965_v24  ;;  %1790 = vmatpush.bf16.msra.mxu2 %v2981_v63  ;;  %v3006_v24 = vld [vmem:[%s4154_s7 + $0x44] sm:$0xf]  ;;  %v2752_v63 = vld [vmem:[%s4154_s7 + $0x50] sm:$0xf0] }
 0x1e7   : > { %1803 = vmatpush.bf16.msra.mxu3 %v2989_v16  ;;  %1779 = vmatpush.bf16.msrb.mxu1 %v2971_v27  ;;  %v2744_v27 = vld [vmem:[%s4154_s7 + $0x38] sm:$0xf0] }
 0x1ea   : > { %1791 = vmatpush.bf16.msra.mxu2 %v2980_v8  ;;  %1765 = vmatpush.bf16.msrb.mxu0 %v2964_v20 }
 0x1eb   : > { %1804 = vmatpush.bf16.msra.mxu3 %v2988_v18  ;;  %1780 = vmatpush.bf16.msrb.mxu1 %v2970_v28  ;;  %v3008_v18 = vld [vmem:[%s4154_s7 + $0x4c] sm:$0xf0]  ;;  %v2747_v28 = vor.u32 %v3003_v25, %v2744_v27  ;;  %v3022_v25 = vld [vmem:[%s4156_s9 + $0x40] sm:$0xff] }
 0x1ee   : > { %1792 = vmatpush.bf16.msra.mxu2 %v2979_v12  ;;  %1766 = vmatpush.bf16.msrb.mxu0 %v2963_v4 }
 0x1ef   : > { %1805 = vmatpush.bf16.msra.mxu3 %v2987_v10 }
 0x1f2   : > { %1793 = vmatpush.bf16.msra.mxu2 %v2978_v23  ;;  %1767 = vmatpush.bf16.msrb.mxu0 %v2962_v57  ;;  %v2734_v23 = vld [vmem:[%s4154_s7 + $0x20] sm:$0xf] }
 0x1f3   : > { %1806 = vmatpush.bf16.msra.mxu3 %v2986_v22  ;;  %v3004_v22 = vld [vmem:[%s4154_s7 + $0x2c] sm:$0xf0] }
 0x1f4   : > { %v2735_v57 = vor.u32 %v3004_v22, %v2734_v23  ;;  %v3023_v23 = vld [vmem:[%s4156_s9 + $0x48] sm:$0xff] }
 0x1f5   : > { %v3031_v22 = vld [vmem:[%s4156_s9 + $0x88] sm:$0xff] }
 0x1f6   : > { %1816 = vmatpush.bf16.msra.mxu0 %v2997_v29  ;;  %v2998_v29 = vld [vmem:[%s4154_s7 + $0x4] sm:$0xf] }
 0x1fa   : > { %1817 = vmatpush.bf16.msra.mxu0 %v2996_v19  ;;  %v2720_v19 = vld [vmem:[%s4154_s7 + $0x10] sm:$0xf0] }
 0x1fe   : > { %1818 = vmatpush.bf16.msra.mxu0 %v2995_v53  ;;  %v2723_v53 = vor.u32 %v2998_v29, %v2720_v19 }
 0x202   : > { %1819 = vmatpush.bf16.msra.mxu0 %v2994_v40  ;;  %v3021_v40 = vld [vmem:[%s4156_s9 + $0x38] sm:$0xff] }
 0x258   : > { %v1387_v43 = vpop.f32.mrf.mxu2  ;;  %v1401_v37 = vpop.f32.mrf.mxu3 }
 0x259   : > { %v1388_v61 = vadd.f32 %v3189_v51, %v1387_v43 }
 0x25b   : > { %v1402_v0 = vadd.f32 %v1401_v37, %v1388_v61  ;;  %v2767_v61 = vor.u32 %v3012_v59, %v2766_v58  ;;  %v3026_v58 = vld [vmem:[%s4156_s9 + $0x60] sm:$0xff] }
 0x25c   : > { %v3034_v59 = vld [vmem:[%s4156_s9 + $0xa0] sm:$0xff] }
 0x25d   : > { %1940 = vmatpush.bf16.msra.mxu1 %v2767_v61 }
 0x260   : > { %v1389_v52 = vpop.f32.mrf.mxu2  ;;  %v1403_v46 = vpop.f32.mrf.mxu3 }
 0x261   : > { %v1390_v55 = vadd.f32 %v3189_v51, %v1389_v52  ;;  %v2768_v51 = vld [vmem:[%s4154_s7 + $0x70] sm:$0xf0]  ;;  %v2774_v52 = vld [vmem:[%s4154_s7 + $0x68] sm:$0xf] }
 0x263   : > { %v3833_v62 = vadd.f32 %v1403_v46, %v1390_v55  ;;  %v2771_v46 = vor.u32 %v3010_v50, %v2768_v51  ;;  %v3013_v55 = vld [vmem:[%s4154_s7 + $0x74] sm:$0xf0] }
 0x264   : > { %v2775_v56 = vor.u32 %v3013_v55, %v2774_v52  ;;  %v3035_v52 = vld [vmem:[%s4156_s9 + $0xa8] sm:$0xff] }
 0x265   : > { %1953 = vmatpush.bf16.msrb.mxu2 %v2771_v46  ;;  %v3018_v46 = vld [vmem:[%s4156_s9 + $0x20] sm:$0xff] }
 0x266   : > { %1966 = vmatpush.bf16.msrb.mxu3 %v2775_v56  ;;  %v3042_v56 = vld [vmem:[%s4156_s9 + $0xe0] sm:$0xff] }
 0x268   : > { %v1415_v54 = vpop.f32.mrf.mxu2  ;;  %v1429_v5 = vpop.f32.mrf.mxu3 }
 0x269   : > { %v1416_v3 = vadd.f32 %v1415_v54, %v1402_v0  ;;  %v2755_v0 = vor.u32 %v3006_v24, %v2752_v63  ;;  %v2758_v54 = vld [vmem:[%s4154_s7 + $0x48] sm:$0xf]  ;;  %v3025_v24 = vld [vmem:[%s4156_s9 + $0x58] sm:$0xff] }
 0x26b   : > { %v1430_v11 = vadd.f32 %v1429_v5, %v1416_v3  ;;  %v3009_v3 = vld [vmem:[%s4154_s7 + $0x54] sm:$0xf0]  ;;  %v2750_v5 = vld [vmem:[%s4154_s7 + $0x40] sm:$0xf]  ;;  %1954 = vmatpush.bf16.msrb.mxu2 %v2755_v0 }
 0x26c   : > { %v2759_v8 = vor.u32 %v3009_v3, %v2758_v54  ;;  %v2751_v12 = vor.u32 %v3008_v18, %v2750_v5  ;;  %v3033_v0 = vld [vmem:[%s4156_s9 + $0x98] sm:$0xff]  ;;  %v3016_v54 = vld [vmem:[%s4156_s9 + $0x10] sm:$0xff] }
 0x26d   : > { %v1434_v21 = vmax.f32 %v1430_v11, 0.0  ;;  %v3007_v11 = vld [vmem:[%s4154_s7 + $0x4c] sm:$0xf]  ;;  %v3040_v5 = vld [vmem:[%s4156_s9 + $0xd0] sm:$0xff] }
 0x26e   : > { %1967 = vmatpush.bf16.msrb.mxu3 %v2759_v8  ;;  %1941 = vmatpush.bf16.msra.mxu1 %v2751_v12 }
 0x26f   : > { %v1443_v13 = vrot.slane %v1434_v21, 3  ;;  %v1437_v14 = vrot.slane %v1434_v21, 1  ;;  %v1449_v15 = vrot.slane %v1434_v21, 5  ;;  %v1455_v9 = vrot.slane %v1434_v21, 7 }
 0x270   : > { %v1453_v31 = vrot.slane %v1434_v21, 6  ;;  %v1447_v33 = vrot.slane %v1434_v21, 4  ;;  %v1441_v42 = vrot.slane %v1434_v21, 2  ;;  %v1417_v45 = vpop.f32.mrf.mxu2  ;;  %v1431_v39 = vpop.f32.mrf.mxu3 }
 0x271   : > { %1444 = vrot.lane.b32.xlu0 %v1443_v13, %s4165_s13  ;;  %1438 = vrot.lane.b32.xlu1 %v1437_v14, %s4165_s13  ;;  %v3183_v17 = vpack.i.bf16 %v1455_v9, %v1449_v15  ;;  %v1418_v47 = vadd.f32 %v1417_v45, %v3833_v62  ;;  %v2776_v62 = vld [vmem:[%s4154_s7 + $0x78] sm:$0xf0]  ;;  %v3002_v13 = vld [vmem:[%s4154_s7 + $0x24] sm:$0xf] }
 0x272   : > { %v2779_v16 = vor.u32 %v3011_v60, %v2776_v62  ;;  %v2736_v14 = vld [vmem:[%s4154_s7 + $0x30] sm:$0xf0]  ;;  %v2742_v15 = vld [vmem:[%s4154_s7 + $0x28] sm:$0xf]  ;;  %1942 = vmatpush.bf16.msra.mxu1 %v2735_v57  ;;  %v3017_v60 = vld [vmem:[%s4156_s9 + $0x18] sm:$0xff] }
 0x273   : > { %3184 = vrot.lane.b32.xlu2 %v3183_v17, %s4165_s13  ;;  %v1432_v48 = vadd.f32 %v1431_v39, %v1418_v47  ;;  %v2739_v9 = vor.u32 %v3002_v13, %v2736_v14  ;;  %v3005_v17 = vld [vmem:[%s4154_s7 + $0x34] sm:$0xf0]  ;;  %v3028_v45 = vld [vmem:[%s4156_s9 + $0x70] sm:$0xff]  ;;  %v3019_v39 = vld [vmem:[%s4156_s9 + $0x28] sm:$0xff]  ;;  %s2315_s13 = scalar_lea.hbm %s4158_s11, %s3338_s21 }
 0x274   : > { %v2743_v20 = vor.u32 %v3005_v17, %v2742_v15  ;;  %v3036_v47 = vld [vmem:[%s4156_s9 + $0xb0] sm:$0xff]  ;;  %v3041_v62 = vld [vmem:[%s4156_s9 + $0xd8] sm:$0xff]  ;;  %v3015_v13 = vld [vmem:[%s4156_s9 + $0x8] sm:$0xff]  ;;  %s2319_s25 = sshll.u32 %s2315_s13, 4  ;;  %s2320_s25 = int_to_ptr.hbm [resolvable:$true] %s2319_s25 }
 0x275   : > { %v1435_v1 = vmax.f32 %v1432_v48, 0.0  ;;  %1955 = vmatpush.bf16.msrb.mxu2 %v2739_v9  ;;  %v3043_v48 = vld [vmem:[%s4156_s9 + $0xe8] sm:$0xff]  ;;  %v3024_v15 = vld [vmem:[%s4156_s9 + $0x50] sm:$0xff]  ;;  %v3014_v17 = vld [vmem:[%s4156_s9] sm:$0xff]  ;;  %s3204_s15 = sshra.s32 %s2320_s25, 4  ;;  %s3205_s15 = int_to_ptr.hbm [resolvable:$true] %s3204_s15 }
 0x276   : > { %1968 = vmatpush.bf16.msrb.mxu3 %v2743_v20  ;;  %v3039_v14 = vld [vmem:[%s4156_s9 + $0xc8] sm:$0xff]  ;;  %v3032_v9 = vld [vmem:[%s4156_s9 + $0x90] sm:$0xff]  ;;  %v3038_v20 = vld [vmem:[%s4156_s9 + $0xc0] sm:$0xff]  ;;  %s3206_s30 = scalar_lea.hbm %s3205_s15, 1  ;;  %p3211_p0 = scmp.lt.s32.totalorder %s3205_s15, %s4158_s11 }
 0x277   : > { %v1467_v49 = vpack.c.bf16 %v1435_v1, %v1435_v1  ;;  %v3027_v1 = vld [vmem:[%s4156_s9 + $0x68] sm:$0xff]  ;;  %p3207_p11 = scmp.ne.s32.totalorder %s3205_s15, %s3206_s30  ;;  %p3212_p1 = scmp.lt.s32.totalorder %s3210_s14, %s3206_s30 }
 0x279   : > { %1956 = vmatpush.bf16.msrb.mxu2 %v2723_v53  ;;  %p3208_p12 = pnand %p3207_p11, %p3355_p5  ;;  %p3213_p2 = por %p3212_p1, %p3211_p0 }
 0x27b   : > { %p3209_p13 = pneg %p3208_p12 }
 0x27d   : > { %p3214_p3 = pnand %p3213_p2, %p3209_p13 }
 0x2cd   : > { %v3185_v30 = vpop.permute.xlu2 %3184 }
 0x2ce   : > { %v3187_v32 = vunpack.i.h.bf16 %v3185_v30  ;;  %v3186_v41 = vunpack.i.l.bf16 %v3185_v30  ;;  %v2726_v30 = vld [vmem:[%s4154_s7 + $0x8] sm:$0xf] }
 0x2d0   : > { %v1462_v7 = vsel %vm423_vm0, %v1453_v31, %v3187_v32  ;;  %v1461_v35 = vsel %vm423_vm0, %v1447_v33, %v3186_v41  ;;  %v3001_v31 = vld [vmem:[%s4154_s7 + $0x14] sm:$0xf0]  ;;  %v2718_v32 = vld [vmem:[%s4154_s7] sm:$0xf]  ;;  %v3000_v41 = vld [vmem:[%s4154_s7 + $0xc] sm:$0xf0] }
 0x2d1   : > { %v1466_v36 = vpack.c.bf16 %v1462_v7, %v1462_v7  ;;  %v1465_v38 = vpack.c.bf16 %v1461_v35, %v1461_v35  ;;  %v2727_v33 = vor.u32 %v3001_v31, %v2726_v30  ;;  %v2719_v7 = vor.u32 %v3000_v41, %v2718_v32  ;;  %v2999_v35 = vld [vmem:[%s4154_s7 + $0xc] sm:$0xf] }
 0x2d3   : > { %1794 = vmatmul.bf16.vlgmr.msra.gmra.mxu2 %v1465_v38  ;;  %1807 = vmatmul.bf16.vlgmr.msra.gmra.mxu3 %v1466_v36  ;;  %v2728_v36 = vld [vmem:[%s4154_s7 + $0x18] sm:$0xf0] }
 0x2d4   : > { %v2731_v38 = vor.u32 %v2999_v35, %v2728_v36  ;;  %1969 = vmatpush.bf16.msrb.mxu3 %v2727_v33  ;;  %1943 = vmatpush.bf16.msra.mxu1 %v2719_v7 }
 0x2e3   : > { %v1445_v2 = vpop.permute.xlu0 %1444  ;;  %v1439_v43 = vpop.permute.xlu1 %1438 }
 0x2e4   : > { %v1460_v37 = vsel %vm423_vm0, %v1441_v42, %v1445_v2  ;;  %v1459_v44 = vsel %vm423_vm0, %v1434_v21, %v1439_v43  ;;  %v2760_v21 = vld [vmem:[%s4154_s7 + $0x58] sm:$0xf0] }
 0x2e5   : > { %v1464_v34 = vpack.c.bf16 %v1460_v37, %v1460_v37  ;;  %v1463_v6 = vpack.c.bf16 %v1459_v44, %v1459_v44  ;;  %v2763_v10 = vor.u32 %v3007_v11, %v2760_v21  ;;  %v3045_v42 = vld [vmem:[%s4156_s9 + $0xf8] sm:$0xff] }
 0x2e6   : > { %v3029_v2 = vld [vmem:[%s4156_s9 + $0x78] sm:$0xff] }
 0x2e7   : > { %1768 = vmatmul.bf16.vlgmr.msrb.gmra.mxu0 %v1463_v6  ;;  %1781 = vmatmul.bf16.vlgmr.msrb.gmra.mxu1 %v1464_v34  ;;  %v3037_v43 = vld [vmem:[%s4156_s9 + $0xb8] sm:$0xff]  ;;  %v3020_v34 = vld [vmem:[%s4156_s9 + $0x30] sm:$0xff] }
 0x2e8   : > { %1979 = vmatpush.bf16.msrb.mxu0 %v2779_v16  ;;  %2253 = vmatpush.bf16.msrb.mxu1 %v3021_v40  ;;  %v3044_v6 = vld [vmem:[%s4156_s9 + $0xf0] sm:$0xff] }
 0x2e9   : > { %2266 = vmatpush.bf16.msra.mxu2 %v3029_v2  ;;  %2279 = vmatpush.bf16.msra.mxu3 %v3037_v43 }
 0x2ec   : > { %1980 = vmatpush.bf16.msrb.mxu0 %v2763_v10  ;;  %2254 = vmatpush.bf16.msrb.mxu1 %v3020_v34 }
 0x2ed   : > { %2267 = vmatpush.bf16.msra.mxu2 %v3028_v45  ;;  %2280 = vmatpush.bf16.msra.mxu3 %v3036_v47 }
 0x2f0   : > { %1981 = vmatpush.bf16.msrb.mxu0 %v2747_v28  ;;  %2255 = vmatpush.bf16.msrb.mxu1 %v3019_v39 }
 0x2f1   : > { %2268 = vmatpush.bf16.msra.mxu2 %v3027_v1  ;;  %2281 = vmatpush.bf16.msra.mxu3 %v3035_v52 }
 0x2f4   : > { %1982 = vmatpush.bf16.msrb.mxu0 %v2731_v38  ;;  %2256 = vmatpush.bf16.msrb.mxu1 %v3018_v46 }
 0x2f5   : > { %2269 = vmatpush.bf16.msra.mxu2 %v3026_v58  ;;  %2282 = vmatpush.bf16.msra.mxu3 %v3034_v59 }
 0x2f7   : > { %2715 = vmatmul.msk.bf16.vlgmr.msra.gmra.mxu0 %vm423_vm0, %v1467_v49  ;;  %v1540_v49 = vld [vmem:[%s4153_s6] sm:$0x1] }
 0x2f8   : > { %2292 = vmatpush.bf16.msra.mxu0 %v3045_v42  ;;  %2257 = vmatpush.bf16.msrb.mxu1 %v3017_v60 }
 0x2f9   : > { %2270 = vmatpush.bf16.msra.mxu2 %v3025_v24  ;;  %2283 = vmatpush.bf16.msra.mxu3 %v3033_v0 }
 0x2fc   : > { %2293 = vmatpush.bf16.msra.mxu0 %v3044_v6  ;;  %2258 = vmatpush.bf16.msrb.mxu1 %v3016_v54 }
 0x2fd   : > { %2271 = vmatpush.bf16.msra.mxu2 %v3024_v15  ;;  %2284 = vmatpush.bf16.msra.mxu3 %v3032_v9 }
 0x300   : > { %2294 = vmatpush.bf16.msra.mxu0 %v3043_v48  ;;  %2259 = vmatpush.bf16.msrb.mxu1 %v3015_v13  ;;  %v2060_v48 = vld [vmem:[%s4157_s10] sm:$0x1] }
 0x301   : > { %2272 = vmatpush.bf16.msra.mxu2 %v3023_v23  ;;  %2285 = vmatpush.bf16.msra.mxu3 %v3031_v22 }
 0x304   : > { %2295 = vmatpush.bf16.msra.mxu0 %v3042_v56  ;;  %2260 = vmatpush.bf16.msrb.mxu1 %v3014_v17 }
 0x305   : > { %2273 = vmatpush.bf16.msra.mxu2 %v3022_v25 }
 0x308   : > { %2296 = vmatpush.bf16.msra.mxu0 %v3041_v62 }
 0x30c   : > { %2297 = vmatpush.bf16.msra.mxu0 %v3040_v5 }
 0x310   : > { %2298 = vmatpush.bf16.msra.mxu0 %v3039_v14 }
 0x314   : > { %2299 = vmatpush.bf16.msra.mxu0 %v3038_v20 }
 0x356   : > { %v3973_v4 = vpop.f32.mrf.mxu2  ;;  %v3975_v26 = vpop.f32.mrf.mxu3 }
 0x35e   : > { %v1797_v37 = vpop.f32.mrf.mxu2  ;;  %v1810_v44 = vpop.f32.mrf.mxu3 }
 0x364   : > { %v1769_v50 = vpop.f32.mrf.mxu0  ;;  %v1782_v51 = vpop.f32.mrf.mxu1 }
 0x365   : > { %v1770_v55 = vadd.f32 %v1769_v50, %v1540_v49 }
 0x367   : > { %v1783_v61 = vadd.f32 %v1782_v51, %v1770_v55 }
 0x369   : > { %v1796_v3 = vadd.f32 %v3973_v4, %v1783_v61  ;;  %v3030_v4 = vld [vmem:[%s4156_s9 + $0x80] sm:$0xff] }
 0x36a   : > { %2286 = vmatpush.bf16.msra.mxu3 %v3030_v4 }
 0x36b   : > { %v1809_v8 = vadd.f32 %v3975_v26, %v1796_v3  ;;  %v1843_v26 = vld [vmem:[%s4155_s8] sm:$0xf] }
 0x36c   : > { %v1771_v63 = vpop.f32.mrf.mxu0  ;;  %v1784_v16 = vpop.f32.mrf.mxu1  ;;  %v1925_v57 = vperm.slane %v1843_v26, 0  ;;  %v1928_v27 = vperm.slane %v1843_v26, 3  ;;  %v1926_v31 = vperm.slane %v1843_v26, 1  ;;  %v1927_v41 = vperm.slane %v1843_v26, 2 }
 0x374   : > { %v1821_v18 = vpop.f32.mrf.mxu0 }
 0x375   : > { %v1822_v11 = vadd.f32 %v1821_v18, %v1809_v8 }
 0x377   : > { %v1825_v21 = vmax.f32 %v1822_v11, 0.0 }
 0x379   : > { %v1826_v12 = vpack.c.bf16 %v1825_v21, %v1825_v21 }
 0x37b   : > { %2780 = vmatmul.msk.bf16.vlgmr.msra.gmra.mxu1 %vm423_vm0, %v1826_v12  ;;  %2781 = vmatmul.msk.bf16.vlgmr.msrb.gmra.mxu2 %vm423_vm0, %v1826_v12 }
 0x37c   : > { %2782 = vmatmul.msk.bf16.vlgmr.msrb.gmra.mxu3 %vm423_vm0, %v1826_v12  ;;  %2783 = vmatmul.msk.bf16.vlgmr.msrb.gmra.mxu0 %vm423_vm0, %v1826_v12  ;;  %v1823_v10 = vpop.f32.mrf.mxu0 }
 0x3f8   : > { %v1945_v28 = vpop.f32.mrf.mxu1 }
 0x3f9   : > { %v1946_v29 = vadd.f32 %v1945_v28, %v1925_v57  ;;  %v1984_v19 = vpop.f32.mrf.mxu0 }
 0x3fa   : > { %v1985_v30 = vadd.f32 %v1984_v19, %v1928_v27 }
 0x3fb   : > { %v1988_v53 = vmax.f32 %v1946_v29, 0.0 }
 0x3fc   : > { %v1991_v32 = vmax.f32 %v1985_v30, 0.0 }
 0x3fd   : > { %v1992_v33 = vpack.c.bf16 %v1988_v53, %v1988_v53 }
 0x3fe   : > { %v1995_v7 = vpack.c.bf16 %v1991_v32, %v1991_v32  ;;  %v1958_v35 = vpop.f32.mrf.mxu2 }
 0x3ff   : > { %v1959_v36 = vadd.f32 %v1958_v35, %v1926_v31  ;;  %v1971_v38 = vpop.f32.mrf.mxu3  ;;  %2261 = vmatmul.bf16.vlgmr.msrb.gmra.mxu1 %v1992_v33 }
 0x400   : > { %v1972_v40 = vadd.f32 %v1971_v38, %v1927_v41  ;;  %2300 = vmatmul.bf16.vlgmr.msra.gmra.mxu0 %v1995_v7  ;;  %v1947_v42 = vpop.f32.mrf.mxu1 }
 0x401   : > { %v1989_v2 = vmax.f32 %v1959_v36, 0.0  ;;  %v1986_v43 = vpop.f32.mrf.mxu0 }
 0x402   : > { %v1990_v37 = vmax.f32 %v1972_v40, 0.0 }
 0x403   : > { %v1993_v44 = vpack.c.bf16 %v1989_v2, %v1989_v2 }
 0x404   : > { %v1994_v34 = vpack.c.bf16 %v1990_v37, %v1990_v37 }
 0x405   : > { %2274 = vmatmul.bf16.vlgmr.msra.gmra.mxu2 %v1993_v44 }
 0x406   : > { %2287 = vmatmul.bf16.vlgmr.msra.gmra.mxu3 %v1994_v34  ;;  %v1960_v6 = vpop.f32.mrf.mxu2 }
 0x407   : > { %v1973_v45 = vpop.f32.mrf.mxu3 }
 0x47c   : > { %v2262_v47 = vpop.f32.mrf.mxu1 }
 0x47d   : > { %v2301_v39 = vpop.f32.mrf.mxu0  ;;  %v2263_v50 = vadd.f32 %v2262_v47, %v2060_v48 }
 0x484   : > { %v2264_v1 = vpop.f32.mrf.mxu1 }
 0x485   : > { %v2303_v49 = vpop.f32.mrf.mxu0 }
 0x488   : > { %v2275_v51 = vpop.f32.mrf.mxu2 }
 0x489   : > { %v2276_v52 = vadd.f32 %v2275_v51, %v2263_v50  ;;  %v2288_v46 = vpop.f32.mrf.mxu3 }
 0x48b   : > { %v2289_v55 = vadd.f32 %v2288_v46, %v2276_v52 }
 0x48d   : > { %v2302_v56 = vadd.f32 %v2301_v39, %v2289_v55 }
 0x48f   : > { %2305 = vst [vmem:[%s378_s22] sm:$0x1] %v2302_v56 }
 0x490   : > { %v2277_v58 = vpop.f32.mrf.mxu2 }
 0x491   : > { %3217 = shalt.err (!%p3214_p3)
}
 0x492   : > { %3081 = dma.vmem_to_hbm [thread:$0]  (%p3355_p5), %s2318_s24, 16, %s2320_s25, %s2307_s29   ;;  %v2290_v59 = vpop.f32.mrf.mxu3 }
 0x493 PF: > { %p3087_p4 = scmp.ge.s32.totalorder %s3252_s20, 2  ;;  %s2331_s0 = sand.u32 1, %s3240_s17  }
 0x494   : > { %s2332_s22 = scalar_lea.sflag [#allocation3], %s2331_s0 }
 0x495   : > { %p3084_p7 = pnand %p3087_p4, %p3359_p6 }
 0x497   : > { %p3085_p8 = pneg %p3084_p7 }
 0x499   : > { %3235 = dma.done.wait (%p3085_p8), %s2332_s22, 16  }
 0x49a   : > { %3237 = vsyncadd (%p3085_p8), %s2332_s22, 4294967280  ;;  %p21_p9 = scmp.ge.s32.totalorder %s3342_s23, 4   ;;  %s4166_s17 = smov %s3244_s18 }
 0x49b   : > { %s4167_s18 = smov %s3248_s19  ;;  %s4168_s19 = smov %s3353_s26 }
 0x49c   : > { %s4169_s20 = smov %s3342_s23  ;;  %23 = sbr.rel (!%p21_p9) target bundleno = 5 (0x5), region = 99 }
 0x4a1   :  { %2337 = vsyncpa [#allocation3], 1 }
 0x4a2   :  { %2339 = vsyncpa [#allocation3 + $0x1], 1 }

</bundles_post_ra>
